<compile_context>
chip_gen: v7x
topology: tpu7x:2x2x1
jax: 0.10.0
libtpu: 0.0.40
codegen_flags: <defaults>
</compile_context>

<pallas_src>
import functools

import jax
import jax.numpy as jnp
import numpy as np
from jax import lax
from jax.experimental import pallas as pl
from jax.experimental.pallas import tpu as pltpu


def _bottleneck_kernel(H, W,
                       x_ref, mask_ref,
                       w1_ref, b1_ref, w2_ref, b2_ref, w3_ref, b3_ref,
                       o_ref, pad_ref):
    Wp = W + 2
    strip = H * Wp
    Cmid = w1_ref.shape[1]

    x = x_ref[0]                                        # (P, Cin) f32, zero-padded

    # ---- conv1 (1x1, BN1 scale folded into w1) + bias + ReLU ----------------
    # Computed directly in the padded layout; the (P,1) mask zeroes the halo /
    # tail rows (otherwise ReLU(b1) would leak into conv2's zero padding).
    h1 = jnp.dot(x.astype(jnp.bfloat16), w1_ref[...],
                 preferred_element_type=jnp.float32)
    h1 = jnp.maximum(h1 + b1_ref[...], 0.0) * mask_ref[...]
    pad_ref[...] = h1                                   # single contiguous store

    # ---- conv2 (3x3) + bias + ReLU: 9 full-strip matmuls --------------------
    # Strip position s = h*(W+2) + w; positions with w >= W are junk columns
    # that the wrapper drops, so no per-row extraction is needed in-kernel.
    acc = jnp.zeros((strip, Cmid), dtype=jnp.float32)
    for dh in range(3):
        for dw in range(3):
            off = dh * Wp + dw
            tap = pad_ref[pl.ds(off, strip), :].astype(jnp.bfloat16)
            acc = acc + jnp.dot(tap, w2_ref[dh * 3 + dw],
                                preferred_element_type=jnp.float32)
    h2 = jnp.maximum(acc + b2_ref[...], 0.0)

    # ---- conv3 (1x1 expand, BN3 scale folded) + bias + residual + ReLU ------
    # Residual for strip position s lives at padded-input index s + (W+2) + 1.
    h3 = jnp.dot(h2.astype(jnp.bfloat16), w3_ref[...],
                 preferred_element_type=jnp.float32)
    resid = x[Wp + 1:Wp + 1 + strip, :]                 # f32, exact residual
    o_ref[0] = jnp.maximum(h3 + b3_ref[...] + resid, 0.0)


def _fold_bn(gamma, beta, mean, var, eps=1e-5):
    scale = gamma / jnp.sqrt(var + eps)
    bias = beta - mean * scale
    return scale, bias


def recurrent_res_pallas(x_nchw, params):
    N, Cin, H, W = x_nchw.shape
    w1, w2, w3 = params["w1"], params["w2"], params["w3"]      # PyTorch OIHW
    Cmid = w1.shape[0]
    Cout = w3.shape[0]
    assert Cout == Cin, "downsample=None requires inplane == 4*outplane"

    Wp = W + 2
    strip = H * Wp
    P_core = (H + 2) * Wp
    # Tail rows keep the last conv2 tap slice (offset 2*Wp+2) in bounds; round
    # the padded length up to a sublane multiple.
    P = ((P_core + 2 + 7) // 8) * 8

    # NCHW -> zero-padded channels-last strip layout (N, P, Cin), f32.
    x_nhwc = jnp.transpose(x_nchw, (0, 2, 3, 1)).astype(jnp.float32)
    x_pad = jnp.zeros((N, H + 2, Wp, Cin), jnp.float32)
    x_pad = x_pad.at[:, 1:H + 1, 1:W + 1, :].set(x_nhwc)
    x_pad = x_pad.reshape(N, P_core, Cin)
    x_pad = jnp.pad(x_pad, ((0, 0), (0, P - P_core), (0, 0)))

    # Interior (non-halo, non-tail) mask in the same padded layout.
    mask = jnp.zeros((H + 2, Wp), jnp.float32).at[1:H + 1, 1:W + 1].set(1.0)
    mask = jnp.pad(mask.reshape(P_core), (0, P - P_core)).reshape(P, 1)

    # Fold BN scales into the conv weights (per output channel); keep biases.
    s1, b1 = _fold_bn(params["g1"], params["be1"], params["m1"], params["v1"])
    s2, b2 = _fold_bn(params["g2"], params["be2"], params["m2"], params["v2"])
    s3, b3 = _fold_bn(params["g3"], params["be3"], params["m3"], params["v3"])

    # Conv weights: OIHW -> matmul layouts, BN-scaled, bf16 for the MXU.
    w1_k = (jnp.transpose(w1[:, :, 0, 0], (1, 0)) * s1[None, :]).astype(jnp.bfloat16)
    w2_k = (jnp.transpose(w2, (2, 3, 1, 0)).reshape(9, Cmid, Cmid)
            * s2[None, None, :]).astype(jnp.bfloat16)              # (tap, Cin, Cout)
    w3_k = (jnp.transpose(w3[:, :, 0, 0], (1, 0)) * s3[None, :]).astype(jnp.bfloat16)
    b1 = b1.reshape(1, Cmid).astype(jnp.float32)
    b2 = b2.reshape(1, Cmid).astype(jnp.float32)
    b3 = b3.reshape(1, Cout).astype(jnp.float32)

    # NOTE: at this tiny test size (Cmid=4, Cout=16) lanes are heavily masked;
    # production shapes (C multiples of 128) make these stores/matmuls dense.
    kernel = functools.partial(_bottleneck_kernel, H, W)
    out = pl.pallas_call(
        kernel,
        out_shape=jax.ShapeDtypeStruct((N, strip, Cout), jnp.float32),
        grid_spec=pltpu.PrefetchScalarGridSpec(
            num_scalar_prefetch=0,
            grid=(N,),
            in_specs=[
                pl.BlockSpec((1, P, Cin), lambda b: (b, 0, 0)),
                pl.BlockSpec((P, 1), lambda b: (0, 0)),
                pl.BlockSpec((Cin, Cmid), lambda b: (0, 0)),
                pl.BlockSpec((1, Cmid), lambda b: (0, 0)),
                pl.BlockSpec((9, Cmid, Cmid), lambda b: (0, 0, 0)),
                pl.BlockSpec((1, Cmid), lambda b: (0, 0)),
                pl.BlockSpec((Cmid, Cout), lambda b: (0, 0)),
                pl.BlockSpec((1, Cout), lambda b: (0, 0)),
            ],
            out_specs=pl.BlockSpec((1, strip, Cout), lambda b: (b, 0, 0)),
            scratch_shapes=[
                pltpu.VMEM((P, Cmid), jnp.float32),   # zero-padded conv1 output
            ],
        ),
        compiler_params=pltpu.CompilerParams(
            dimension_semantics=("parallel",)),
    )(x_pad, mask, w1_k, b1, w2_k, b2, w3_k, b3)

    # Drop the 2 junk halo columns of the strip layout, back to NCHW.
    out = out.reshape(N, H, Wp, Cout)[:, :, :W, :]
    return jnp.transpose(out, (0, 3, 1, 2))


def recurrent_res_reference(x, params, eps=1e-5):
    """Pure-JAX f32 reference with XLA convs (NCHW, matching PyTorch semantics)."""
    def bn(y, g, b, m, v):
        g = g[None, :, None, None]; b = b[None, :, None, None]
        m = m[None, :, None, None]; v = v[None, :, None, None]
        return g * (y - m) / jnp.sqrt(v + eps) + b

    def conv(y, w, padding):
        return lax.conv_general_dilated(
            y, w, window_strides=(1, 1), padding=padding,
            dimension_numbers=("NCHW", "OIHW", "NCHW"))

    out = conv(x, params["w1"], [(0, 0), (0, 0)])
    out = jax.nn.relu(bn(out, params["g1"], params["be1"], params["m1"], params["v1"]))
    out = conv(out, params["w2"], [(1, 1), (1, 1)])
    out = jax.nn.relu(bn(out, params["g2"], params["be2"], params["m2"], params["v2"]))
    out = conv(out, params["w3"], [(0, 0), (0, 0)])
    out = bn(out, params["g3"], params["be3"], params["m3"], params["v3"])
    out = out + x
    return jax.nn.relu(out)


if __name__ == "__main__":
    key = jax.random.PRNGKey(0)
    N, H, W = 2, 8, 8
    outplane = 4
    inplane = outplane * 4          # = 16, so the residual add is valid
    Cmid, Cout = outplane, outplane * 4

    keys = jax.random.split(key, 8)

    def bn_params(k, c):
        k1, k2, k3, k4 = jax.random.split(k, 4)
        return (1.0 + 0.1 * jax.random.normal(k1, (c,), jnp.float32),   # gamma
                0.1 * jax.random.normal(k2, (c,), jnp.float32),         # beta
                0.1 * jax.random.normal(k3, (c,), jnp.float32),         # running mean
                jnp.abs(1.0 + 0.1 * jax.random.normal(k4, (c,), jnp.float32)))  # running var

    g1, be1, m1, v1 = bn_params(keys[3], Cmid)
    g2, be2, m2, v2 = bn_params(keys[4], Cmid)
    g3, be3, m3, v3 = bn_params(keys[5], Cout)

    params = {
        # Conv weights in PyTorch OIHW layout (bias=False for all three).
        "w1": 0.2 * jax.random.normal(keys[0], (Cmid, inplane, 1, 1), jnp.float32),
        "w2": 0.2 * jax.random.normal(keys[1], (Cmid, Cmid, 3, 3), jnp.float32),
        "w3": 0.2 * jax.random.normal(keys[2], (Cout, Cmid, 1, 1), jnp.float32),
        "g1": g1, "be1": be1, "m1": m1, "v1": v1,
        "g2": g2, "be2": be2, "m2": m2, "v2": v2,
        "g3": g3, "be3": be3, "m3": m3, "v3": v3,
    }

    x = jax.random.normal(keys[6], (N, inplane, H, W), jnp.float32)

    y_pallas = jax.block_until_ready(recurrent_res_pallas(x, params))
    y_ref = jax.block_until_ready(recurrent_res_reference(x, params))

    # Matmuls run with bf16 inputs (f32 accumulation / f32 residual), so compare
    # against the f32 reference at bf16-appropriate tolerance.
    np.testing.assert_allclose(np.asarray(y_pallas), np.asarray(y_ref),
                               rtol=5e-2, atol=5e-2)
    print("KERNEL_OK")
</pallas_src>

<mosaic_0001>
module attributes {stable_mosaic.version = 11 : i64} {
  func.func @_bottleneck_kernel(%arg0: i32, %arg1: memref<1x104x16xf32, #tpu.memory_space<vmem>>, %arg2: memref<104x1xf32, #tpu.memory_space<vmem>>, %arg3: memref<16x4xbf16, #tpu.memory_space<vmem>>, %arg4: memref<1x4xf32, #tpu.memory_space<vmem>>, %arg5: memref<9x4x4xbf16, #tpu.memory_space<vmem>>, %arg6: memref<1x4xf32, #tpu.memory_space<vmem>>, %arg7: memref<4x16xbf16, #tpu.memory_space<vmem>>, %arg8: memref<1x16xf32, #tpu.memory_space<vmem>>, %arg9: memref<1x80x16xf32, #tpu.memory_space<vmem>>, %arg10: memref<104x4xf32, #tpu.memory_space<vmem>>) attributes {dimension_semantics = [#tpu.dimension_semantics<parallel>], iteration_bounds = array<i64: 2>, scalar_prefetch = 0 : i64, scratch_operands = 1 : i64, tpu.core_type = #tpu.core_type<tc>, window_params = [{transform_indices = @transform_0, window_bounds = array<i64: 1, 104, 16>}, {pipeline_mode = #tpu.pipeline_mode<synchronous>, transform_indices = @transform_1, window_bounds = array<i64: 104, 1>}, {pipeline_mode = #tpu.pipeline_mode<synchronous>, transform_indices = @transform_2, window_bounds = array<i64: 16, 4>}, {pipeline_mode = #tpu.pipeline_mode<synchronous>, transform_indices = @transform_3, window_bounds = array<i64: 1, 4>}, {pipeline_mode = #tpu.pipeline_mode<synchronous>, transform_indices = @transform_4, window_bounds = array<i64: 9, 4, 4>}, {pipeline_mode = #tpu.pipeline_mode<synchronous>, transform_indices = @transform_5, window_bounds = array<i64: 1, 4>}, {pipeline_mode = #tpu.pipeline_mode<synchronous>, transform_indices = @transform_6, window_bounds = array<i64: 4, 16>}, {pipeline_mode = #tpu.pipeline_mode<synchronous>, transform_indices = @transform_7, window_bounds = array<i64: 1, 16>}, {transform_indices = @transform_8, window_bounds = array<i64: 1, 80, 16>}]} {
    %c0 = arith.constant 0 : index
    %c0_0 = arith.constant 0 : index
    %c0_1 = arith.constant 0 : index
    %0 = vector.load %arg1[%c0, %c0_0, %c0_1] : memref<1x104x16xf32, #tpu.memory_space<vmem>>, vector<1x104x16xf32>
    %1 = vector.shape_cast %0 : vector<1x104x16xf32> to vector<104x16xf32>
    %2 = arith.truncf %1 : vector<104x16xf32> to vector<104x16xbf16>
    %c0_2 = arith.constant 0 : index
    %c0_3 = arith.constant 0 : index
    %3 = vector.load %arg3[%c0_2, %c0_3] : memref<16x4xbf16, #tpu.memory_space<vmem>>, vector<16x4xbf16>
    %cst = arith.constant dense<0.000000e+00> : vector<104x4xf32>
    %4 = tpu.matmul %2, %3, %cst {dimension_numbers = #tpu.dot_dimension_numbers<[1], [0], [0], [1], [0, 0, 1, 1], [], []>} : vector<104x16xbf16>, vector<16x4xbf16>, vector<104x4xf32> -> vector<104x4xf32>
    %c0_4 = arith.constant 0 : index
    %c0_5 = arith.constant 0 : index
    %5 = vector.load %arg4[%c0_4, %c0_5] : memref<1x4xf32, #tpu.memory_space<vmem>>, vector<1x4xf32>
    %6 = vector.broadcast %5 : vector<1x4xf32> to vector<104x4xf32>
    %7 = arith.addf %4, %6 : vector<104x4xf32>
    %cst_6 = arith.constant 0.000000e+00 : f32
    %8 = vector.broadcast %cst_6 : f32 to vector<104x4xf32>
    %9 = arith.maximumf %7, %8 : vector<104x4xf32>
    %c0_7 = arith.constant 0 : index
    %c0_8 = arith.constant 0 : index
    %10 = vector.load %arg2[%c0_7, %c0_8] : memref<104x1xf32, #tpu.memory_space<vmem>>, vector<104x1xf32>
    %11 = vector.broadcast %10 : vector<104x1xf32> to vector<104x4xf32>
    %12 = arith.mulf %9, %11 : vector<104x4xf32>
    %c0_9 = arith.constant 0 : index
    %c0_10 = arith.constant 0 : index
    %13 = vector.load %arg10[%c0_9, %c0_10] : memref<104x4xf32, #tpu.memory_space<vmem>>, vector<104x4xf32>
    tpu.vector_store %arg10[%c0_9, %c0_10], %12 {strides = array<i32>} : memref<104x4xf32, #tpu.memory_space<vmem>>, vector<104x4xf32>,
    %cst_11 = arith.constant 0.000000e+00 : f32
    %14 = vector.broadcast %cst_11 : f32 to vector<80x4xf32>
    %c0_12 = arith.constant 0 : index
    %c0_13 = arith.constant 0 : index
    %15 = vector.load %arg10[%c0_12, %c0_13] : memref<104x4xf32, #tpu.memory_space<vmem>>, vector<80x4xf32>
    %16 = arith.truncf %15 : vector<80x4xf32> to vector<80x4xbf16>
    %c0_14 = arith.constant 0 : index
    %c0_15 = arith.constant 0 : index
    %c0_16 = arith.constant 0 : index
    %17 = vector.load %arg5[%c0_14, %c0_15, %c0_16] : memref<9x4x4xbf16, #tpu.memory_space<vmem>>, vector<1x4x4xbf16>
    %18 = vector.shape_cast %17 : vector<1x4x4xbf16> to vector<4x4xbf16>
    %cst_17 = arith.constant dense<0.000000e+00> : vector<80x4xf32>
    %19 = tpu.matmul %16, %18, %cst_17 {dimension_numbers = #tpu.dot_dimension_numbers<[1], [0], [0], [1], [0, 0, 1, 1], [], []>} : vector<80x4xbf16>, vector<4x4xbf16>, vector<80x4xf32> -> vector<80x4xf32>
    %20 = arith.addf %14, %19 : vector<80x4xf32>
    %c1 = arith.constant 1 : index
    %c0_18 = arith.constant 0 : index
    %21 = vector.load %arg10[%c1, %c0_18] : memref<104x4xf32, #tpu.memory_space<vmem>>, vector<80x4xf32>
    %22 = arith.truncf %21 : vector<80x4xf32> to vector<80x4xbf16>
    %c1_19 = arith.constant 1 : index
    %c0_20 = arith.constant 0 : index
    %c0_21 = arith.constant 0 : index
    %23 = vector.load %arg5[%c1_19, %c0_20, %c0_21] : memref<9x4x4xbf16, #tpu.memory_space<vmem>>, vector<1x4x4xbf16>
    %24 = vector.shape_cast %23 : vector<1x4x4xbf16> to vector<4x4xbf16>
    %cst_22 = arith.constant dense<0.000000e+00> : vector<80x4xf32>
    %25 = tpu.matmul %22, %24, %cst_22 {dimension_numbers = #tpu.dot_dimension_numbers<[1], [0], [0], [1], [0, 0, 1, 1], [], []>} : vector<80x4xbf16>, vector<4x4xbf16>, vector<80x4xf32> -> vector<80x4xf32>
    %26 = arith.addf %20, %25 : vector<80x4xf32>
    %c2 = arith.constant 2 : index
    %c0_23 = arith.constant 0 : index
    %27 = vector.load %arg10[%c2, %c0_23] : memref<104x4xf32, #tpu.memory_space<vmem>>, vector<80x4xf32>
    %28 = arith.truncf %27 : vector<80x4xf32> to vector<80x4xbf16>
    %c2_24 = arith.constant 2 : index
    %c0_25 = arith.constant 0 : index
    %c0_26 = arith.constant 0 : index
    %29 = vector.load %arg5[%c2_24, %c0_25, %c0_26] : memref<9x4x4xbf16, #tpu.memory_space<vmem>>, vector<1x4x4xbf16>
    %30 = vector.shape_cast %29 : vector<1x4x4xbf16> to vector<4x4xbf16>
    %cst_27 = arith.constant dense<0.000000e+00> : vector<80x4xf32>
    %31 = tpu.matmul %28, %30, %cst_27 {dimension_numbers = #tpu.dot_dimension_numbers<[1], [0], [0], [1], [0, 0, 1, 1], [], []>} : vector<80x4xbf16>, vector<4x4xbf16>, vector<80x4xf32> -> vector<80x4xf32>
    %32 = arith.addf %26, %31 : vector<80x4xf32>
    %c10 = arith.constant 10 : index
    %c0_28 = arith.constant 0 : index
    %33 = vector.load %arg10[%c10, %c0_28] : memref<104x4xf32, #tpu.memory_space<vmem>>, vector<80x4xf32>
    %34 = arith.truncf %33 : vector<80x4xf32> to vector<80x4xbf16>
    %c3 = arith.constant 3 : index
    %c0_29 = arith.constant 0 : index
    %c0_30 = arith.constant 0 : index
    %35 = vector.load %arg5[%c3, %c0_29, %c0_30] : memref<9x4x4xbf16, #tpu.memory_space<vmem>>, vector<1x4x4xbf16>
    %36 = vector.shape_cast %35 : vector<1x4x4xbf16> to vector<4x4xbf16>
    %cst_31 = arith.constant dense<0.000000e+00> : vector<80x4xf32>
    %37 = tpu.matmul %34, %36, %cst_31 {dimension_numbers = #tpu.dot_dimension_numbers<[1], [0], [0], [1], [0, 0, 1, 1], [], []>} : vector<80x4xbf16>, vector<4x4xbf16>, vector<80x4xf32> -> vector<80x4xf32>
    %38 = arith.addf %32, %37 : vector<80x4xf32>
    %c11 = arith.constant 11 : index
    %c0_32 = arith.constant 0 : index
    %39 = vector.load %arg10[%c11, %c0_32] : memref<104x4xf32, #tpu.memory_space<vmem>>, vector<80x4xf32>
    %40 = arith.truncf %39 : vector<80x4xf32> to vector<80x4xbf16>
    %c4 = arith.constant 4 : index
    %c0_33 = arith.constant 0 : index
    %c0_34 = arith.constant 0 : index
    %41 = vector.load %arg5[%c4, %c0_33, %c0_34] : memref<9x4x4xbf16, #tpu.memory_space<vmem>>, vector<1x4x4xbf16>
    %42 = vector.shape_cast %41 : vector<1x4x4xbf16> to vector<4x4xbf16>
    %cst_35 = arith.constant dense<0.000000e+00> : vector<80x4xf32>
    %43 = tpu.matmul %40, %42, %cst_35 {dimension_numbers = #tpu.dot_dimension_numbers<[1], [0], [0], [1], [0, 0, 1, 1], [], []>} : vector<80x4xbf16>, vector<4x4xbf16>, vector<80x4xf32> -> vector<80x4xf32>
    %44 = arith.addf %38, %43 : vector<80x4xf32>
    %c12 = arith.constant 12 : index
    %c0_36 = arith.constant 0 : index
    %45 = vector.load %arg10[%c12, %c0_36] : memref<104x4xf32, #tpu.memory_space<vmem>>, vector<80x4xf32>
    %46 = arith.truncf %45 : vector<80x4xf32> to vector<80x4xbf16>
    %c5 = arith.constant 5 : index
    %c0_37 = arith.constant 0 : index
    %c0_38 = arith.constant 0 : index
    %47 = vector.load %arg5[%c5, %c0_37, %c0_38] : memref<9x4x4xbf16, #tpu.memory_space<vmem>>, vector<1x4x4xbf16>
    %48 = vector.shape_cast %47 : vector<1x4x4xbf16> to vector<4x4xbf16>
    %cst_39 = arith.constant dense<0.000000e+00> : vector<80x4xf32>
    %49 = tpu.matmul %46, %48, %cst_39 {dimension_numbers = #tpu.dot_dimension_numbers<[1], [0], [0], [1], [0, 0, 1, 1], [], []>} : vector<80x4xbf16>, vector<4x4xbf16>, vector<80x4xf32> -> vector<80x4xf32>
    %50 = arith.addf %44, %49 : vector<80x4xf32>
    %c20 = arith.constant 20 : index
    %c0_40 = arith.constant 0 : index
    %51 = vector.load %arg10[%c20, %c0_40] : memref<104x4xf32, #tpu.memory_space<vmem>>, vector<80x4xf32>
    %52 = arith.truncf %51 : vector<80x4xf32> to vector<80x4xbf16>
    %c6 = arith.constant 6 : index
    %c0_41 = arith.constant 0 : index
    %c0_42 = arith.constant 0 : index
    %53 = vector.load %arg5[%c6, %c0_41, %c0_42] : memref<9x4x4xbf16, #tpu.memory_space<vmem>>, vector<1x4x4xbf16>
    %54 = vector.shape_cast %53 : vector<1x4x4xbf16> to vector<4x4xbf16>
    %cst_43 = arith.constant dense<0.000000e+00> : vector<80x4xf32>
    %55 = tpu.matmul %52, %54, %cst_43 {dimension_numbers = #tpu.dot_dimension_numbers<[1], [0], [0], [1], [0, 0, 1, 1], [], []>} : vector<80x4xbf16>, vector<4x4xbf16>, vector<80x4xf32> -> vector<80x4xf32>
    %56 = arith.addf %50, %55 : vector<80x4xf32>
    %c21 = arith.constant 21 : index
    %c0_44 = arith.constant 0 : index
    %57 = vector.load %arg10[%c21, %c0_44] : memref<104x4xf32, #tpu.memory_space<vmem>>, vector<80x4xf32>
    %58 = arith.truncf %57 : vector<80x4xf32> to vector<80x4xbf16>
    %c7 = arith.constant 7 : index
    %c0_45 = arith.constant 0 : index
    %c0_46 = arith.constant 0 : index
    %59 = vector.load %arg5[%c7, %c0_45, %c0_46] : memref<9x4x4xbf16, #tpu.memory_space<vmem>>, vector<1x4x4xbf16>
    %60 = vector.shape_cast %59 : vector<1x4x4xbf16> to vector<4x4xbf16>
    %cst_47 = arith.constant dense<0.000000e+00> : vector<80x4xf32>
    %61 = tpu.matmul %58, %60, %cst_47 {dimension_numbers = #tpu.dot_dimension_numbers<[1], [0], [0], [1], [0, 0, 1, 1], [], []>} : vector<80x4xbf16>, vector<4x4xbf16>, vector<80x4xf32> -> vector<80x4xf32>
    %62 = arith.addf %56, %61 : vector<80x4xf32>
    %c22 = arith.constant 22 : index
    %c0_48 = arith.constant 0 : index
    %63 = vector.load %arg10[%c22, %c0_48] : memref<104x4xf32, #tpu.memory_space<vmem>>, vector<80x4xf32>
    %64 = arith.truncf %63 : vector<80x4xf32> to vector<80x4xbf16>
    %c8 = arith.constant 8 : index
    %c0_49 = arith.constant 0 : index
    %c0_50 = arith.constant 0 : index
    %65 = vector.load %arg5[%c8, %c0_49, %c0_50] : memref<9x4x4xbf16, #tpu.memory_space<vmem>>, vector<1x4x4xbf16>
    %66 = vector.shape_cast %65 : vector<1x4x4xbf16> to vector<4x4xbf16>
    %cst_51 = arith.constant dense<0.000000e+00> : vector<80x4xf32>
    %67 = tpu.matmul %64, %66, %cst_51 {dimension_numbers = #tpu.dot_dimension_numbers<[1], [0], [0], [1], [0, 0, 1, 1], [], []>} : vector<80x4xbf16>, vector<4x4xbf16>, vector<80x4xf32> -> vector<80x4xf32>
    %68 = arith.addf %62, %67 : vector<80x4xf32>
    %c0_52 = arith.constant 0 : index
    %c0_53 = arith.constant 0 : index
    %69 = vector.load %arg6[%c0_52, %c0_53] : memref<1x4xf32, #tpu.memory_space<vmem>>, vector<1x4xf32>
    %70 = vector.broadcast %69 : vector<1x4xf32> to vector<80x4xf32>
    %71 = arith.addf %68, %70 : vector<80x4xf32>
    %cst_54 = arith.constant 0.000000e+00 : f32
    %72 = vector.broadcast %cst_54 : f32 to vector<80x4xf32>
    %73 = arith.maximumf %71, %72 : vector<80x4xf32>
    %74 = arith.truncf %73 : vector<80x4xf32> to vector<80x4xbf16>
    %c0_55 = arith.constant 0 : index
    %c0_56 = arith.constant 0 : index
    %75 = vector.load %arg7[%c0_55, %c0_56] : memref<4x16xbf16, #tpu.memory_space<vmem>>, vector<4x16xbf16>
    %cst_57 = arith.constant dense<0.000000e+00> : vector<80x16xf32>
    %76 = tpu.matmul %74, %75, %cst_57 {dimension_numbers = #tpu.dot_dimension_numbers<[1], [0], [0], [1], [0, 0, 1, 1], [], []>} : vector<80x4xbf16>, vector<4x16xbf16>, vector<80x16xf32> -> vector<80x16xf32>
    %77 = vector.extract_strided_slice %1 {offsets = [11, 0], sizes = [80, 16], strides = [1, 1]} : vector<104x16xf32> to vector<80x16xf32>
    %c0_58 = arith.constant 0 : index
    %c0_59 = arith.constant 0 : index
    %78 = vector.load %arg8[%c0_58, %c0_59] : memref<1x16xf32, #tpu.memory_space<vmem>>, vector<1x16xf32>
    %79 = vector.broadcast %78 : vector<1x16xf32> to vector<80x16xf32>
    %80 = arith.addf %76, %79 : vector<80x16xf32>
    %81 = arith.addf %80, %77 : vector<80x16xf32>
    %cst_60 = arith.constant 0.000000e+00 : f32
    %82 = vector.broadcast %cst_60 : f32 to vector<80x16xf32>
    %83 = arith.maximumf %81, %82 : vector<80x16xf32>
    %c0_61 = arith.constant 0 : index
    %c0_62 = arith.constant 0 : index
    %c0_63 = arith.constant 0 : index
    %84 = vector.load %arg9[%c0_61, %c0_62, %c0_63] : memref<1x80x16xf32, #tpu.memory_space<vmem>>, vector<1x80x16xf32>
    %85 = vector.shape_cast %84 : vector<1x80x16xf32> to vector<80x16xf32>
    %86 = vector.shape_cast %83 : vector<80x16xf32> to vector<1x80x16xf32>
    tpu.vector_store %arg9[%c0_61, %c0_62, %c0_63], %86 {strides = array<i32>} : memref<1x80x16xf32, #tpu.memory_space<vmem>>, vector<1x80x16xf32>,
    return
  }
  func.func @transform_0(%arg0: i32) -> (i32, i32, i32) {
    %c0_i32 = arith.constant 0 : i32
    %c0_i32_0 = arith.constant 0 : i32
    %c0_i32_1 = arith.constant 0 : i32
    return %arg0, %c0_i32, %c0_i32_0 : i32, i32, i32
  }
  func.func @transform_1(%arg0: i32) -> (i32, i32) {
    %c0_i32 = arith.constant 0 : i32
    %c0_i32_0 = arith.constant 0 : i32
    %c0_i32_1 = arith.constant 0 : i32
    return %c0_i32, %c0_i32_0 : i32, i32
  }
  func.func @transform_2(%arg0: i32) -> (i32, i32) {
    %c0_i32 = arith.constant 0 : i32
    %c0_i32_0 = arith.constant 0 : i32
    %c0_i32_1 = arith.constant 0 : i32
    return %c0_i32, %c0_i32_0 : i32, i32
  }
  func.func @transform_3(%arg0: i32) -> (i32, i32) {
    %c0_i32 = arith.constant 0 : i32
    %c0_i32_0 = arith.constant 0 : i32
    %c0_i32_1 = arith.constant 0 : i32
    return %c0_i32, %c0_i32_0 : i32, i32
  }
  func.func @transform_4(%arg0: i32) -> (i32, i32, i32) {
    %c0_i32 = arith.constant 0 : i32
    %c0_i32_0 = arith.constant 0 : i32
    %c0_i32_1 = arith.constant 0 : i32
    %c0_i32_2 = arith.constant 0 : i32
    return %c0_i32, %c0_i32_0, %c0_i32_1 : i32, i32, i32
  }
  func.func @transform_5(%arg0: i32) -> (i32, i32) {
    %c0_i32 = arith.constant 0 : i32
    %c0_i32_0 = arith.constant 0 : i32
    %c0_i32_1 = arith.constant 0 : i32
    return %c0_i32, %c0_i32_0 : i32, i32
  }
  func.func @transform_6(%arg0: i32) -> (i32, i32) {
    %c0_i32 = arith.constant 0 : i32
    %c0_i32_0 = arith.constant 0 : i32
    %c0_i32_1 = arith.constant 0 : i32
    return %c0_i32, %c0_i32_0 : i32, i32
  }
  func.func @transform_7(%arg0: i32) -> (i32, i32) {
    %c0_i32 = arith.constant 0 : i32
    %c0_i32_0 = arith.constant 0 : i32
    %c0_i32_1 = arith.constant 0 : i32
    return %c0_i32, %c0_i32_0 : i32, i32
  }
  func.func @transform_8(%arg0: i32) -> (i32, i32, i32) {
    %c0_i32 = arith.constant 0 : i32
    %c0_i32_0 = arith.constant 0 : i32
    %c0_i32_1 = arith.constant 0 : i32
    return %arg0, %c0_i32, %c0_i32_0 : i32, i32, i32
  }
}

</mosaic_0001>

<bundles_post_ra>
// kernel: tpu_custom_call.1
= control target key start
LH: loop header
LB: loop body
LE: loop exit
PB: predicated region body
PF: predicated region fallthrough
CT: control target
= control target key end

     0   :  { %s2352_s27 = smov 0   ;;  %s2841_s0 = inlined_call_operand.vmem [shape: f32[2,104,16], index: 0, kind: input, shape index: {}]   ;;  %s2842_s1 = inlined_call_operand.vmem [shape: f32[104,1], index: 1, kind: input, shape index: {}]   ;;  %s2843_s2 = inlined_call_operand.vmem [shape: bf16[16,4], index: 2, kind: input, shape index: {}]   ;;  %s2844_s3 = inlined_call_operand.vmem [shape: f32[1,4], index: 3, kind: input, shape index: {}]   ;;  %s2845_s4 = inlined_call_operand.vmem [shape: bf16[9,4,4], index: 4, kind: input, shape index: {}]   ;;  %s2846_s5 = inlined_call_operand.vmem [shape: f32[1,4], index: 5, kind: input, shape index: {}]   ;;  %s2847_s6 = inlined_call_operand.vmem [shape: bf16[4,16], index: 6, kind: input, shape index: {}]   ;;  %s2848_s7 = inlined_call_operand.vmem [shape: f32[1,16], index: 7, kind: input, shape index: {}]   ;;  %s2849_s8 = inlined_call_operand.vmem [shape: f32[2,80,16], index: 8, kind: output, shape index: {}]  }
   0x1 LB: > { %s1871_s28 = sadd.s32 4294967295, %s2302_s27   ;;  %p1875_p0 = scmp.ge.s32.totalorder %s2302_s27, 1  ;;  %s2302_s27 = sphi %s2352_s27, %s18_s27  }
   0x2   : > { %p262_p1 = scmp.lt.s32.totalorder %s2302_s27, 3 }
   0x4   : > { %p263_p2 = pnand %p1875_p0, %p262_p1 }
   0x5   : > { %v2284_v0 = vld [vmem:[%s2843_s2] sm:$0xff] (!%p263_p2)   ;;  %v2304_v1 = vmov (!%p263_p2), 0.0   ;;  %p296_p3 = scmp.lt.s32.totalorder (!%p263_p2), %s1871_s28, 1  ;;  %v467_v2 = vld [vmem:[%s2842_s1 + $0x10] sm:$0xff] (!%p263_p2)  ;;  %vm2305_vm0 = vmmov (!%p263_p2), 0   ;;  %v2306_v4 = vmov (!%p263_p2), 0  }
   0x6   : > { %266 = sbr.rel (%p263_p2) target bundleno = 893 (0x37d), region = 52  ;;  %2017 = vmatprep.subr.bf16.mxu0 (!%p263_p2), %v2304_v1  ;;  %v469_v3 = vld [vmem:[%s2842_s1 + $0x20] sm:$0xff] (!%p263_p2)  ;;  %2267 = vmatprep.subr.bf16.mxu1 (!%p263_p2), %v2304_v1  ;;  %v468_v5 = vld [vmem:[%s2842_s1 + $0x18] sm:$0xff] (!%p263_p2)  ;;  %v470_v6 = vld [vmem:[%s2842_s1 + $0x28] sm:$0xff] (!%p263_p2)  ;;  %vm342_vm1 = vcmask (!%p263_p2), 130048   ;;  %vm618_vm2 = vcmask (!%p263_p2), 1041408  }
   0x7   : > { %2018 = vmatpush3.bf16.msra.mxu0 (!%p263_p2), %v2284_v0  ;;  %2019 = vmatprep.mubr.msk.bf16.mxu0 (!%p263_p2), %vm2305_vm0, %v2304_v1  ;;  %v471_v10 = vld [vmem:[%s2842_s1 + $0x30] sm:$0xff] (!%p263_p2)  ;;  %v472_v11 = vld [vmem:[%s2842_s1 + $0x38] sm:$0xff] (!%p263_p2)  ;;  %v473_v14 = vld [vmem:[%s2842_s1 + $0x40] sm:$0xff] (!%p263_p2)  ;;  %vm556_vm3 = vcmask (!%p263_p2), 31744   ;;  %vm1754_vm4 = vcmask (!%p263_p2), 1044480  }
   0x8   : > { %2282 = vset.pattern.permute.xlu0 (!%p263_p2), %v2306_v4  ;;  %2283 = vset.pattern.permute.xlu1 (!%p263_p2), %v2306_v4  ;;  %v474_v15 = vld [vmem:[%s2842_s1 + $0x48] sm:$0xff] (!%p263_p2)  ;;  %v475_v17 = vld [vmem:[%s2842_s1 + $0x50] sm:$0xff] (!%p263_p2)  ;;  %v465_v18 = vld [vmem:[%s2842_s1] sm:$0xff] (!%p263_p2) }
   0x9   : > { %490 = vperm.xlu0 (!%p263_p2), %2282, %v467_v2   ;;  %500 = vperm.xlu1 (!%p263_p2), %2283, %v469_v3   ;;  %v466_v21 = vld [vmem:[%s2842_s1 + $0x8] sm:$0xff] (!%p263_p2)  ;;  %v476_v22 = vld [vmem:[%s2842_s1 + $0x58] sm:$0xff] (!%p263_p2)  ;;  %v477_v24 = vld [vmem:[%s2842_s1 + $0x60] sm:$0xff] (!%p263_p2) }
   0xa   : > { %2047 = vmatprep.subr.bf16.mxu0 (!%p263_p2), %v2304_v1  ;;  %2053 = vmatprep.mubr.msk.bf16.mxu1 (!%p263_p2), %vm2305_vm0, %v2304_v1  ;;  %v1887_v36 = vld [vmem:[%s2845_s4 + $0x2] sm:$0x3] (!%p263_p2)  ;;  %v2468_v46 = vld [vmem:[%s2844_s3] ss:$0 sm:$0xff] (!%p263_p2) }
   0xb   : > { %v620_v37 = vsel (!%p263_p2), %vm618_vm2, %v1887_v36, 0 }
   0xc   : > { %2268 = vmatpush3.bf16.msra.mxu1 (!%p263_p2), %v620_v37 }
   0xd   : > { %s2851_s28 = smov (!%p296_p3, %s1871_s28), 1  ;;  %495 = vperm.xlu0 %2282, %v468_v5   ;;  %505 = vperm.xlu1 %2283, %v470_v6  }
   0xe   : > { %s2269_s13 = smul.u32 104, %s2851_s28  ;;  %2069 = vmatprep.subr.bf16.mxu1 %v2304_v1 }
   0xf   : > { %s2270_s29 = smul.u32 80, %s2851_s28 }
  0x10   : > { %s2388_s20 = scalar_lea.vmem %s2841_s0, %s2269_s13 }
  0x11   : > { %v307_v7 = vld [vmem:[%s2388_s20] sm:$0xff]  ;;  %v308_v8 = vld [vmem:[%s2388_s20 + $0x8] sm:$0xff]  ;;  %v309_v12 = vld [vmem:[%s2388_s20 + $0x10] sm:$0xff]  ;;  %510 = vperm.xlu0 %2282, %v471_v10   ;;  %515 = vperm.xlu1 %2283, %v472_v11   ;;  %s2792_s10 = scalar_lea.vmem %s2849_s8, %s2270_s29 }
  0x12   : > { %v320_v9 = vpack.c.bf16 %v308_v8, %v307_v7  ;;  %v310_v13 = vld [vmem:[%s2388_s20 + $0x18] sm:$0xff]  ;;  %v311_v19 = vld [vmem:[%s2388_s20 + $0x20] sm:$0xff]  ;;  %v312_v20 = vld [vmem:[%s2388_s20 + $0x28] sm:$0xff] }
  0x13   : > { %v321_v16 = vpack.c.bf16 %v310_v13, %v309_v12  ;;  %v322_v23 = vpack.c.bf16 %v312_v20, %v311_v19  ;;  %v313_v25 = vld [vmem:[%s2388_s20 + $0x30] sm:$0xff]  ;;  %v314_v26 = vld [vmem:[%s2388_s20 + $0x38] sm:$0xff]  ;;  %v315_v28 = vld [vmem:[%s2388_s20 + $0x40] sm:$0xff] }
  0x14   : > { %2020 = vmatmul.mubr.msk.bf16.vlgmr.msra.gmra.mrb[0].mxu0 %vm342_vm1, %v320_v9  ;;  %v323_v27 = vpack.c.bf16 %v314_v26, %v313_v25  ;;  %v316_v29 = vld [vmem:[%s2388_s20 + $0x48] sm:$0xff]  ;;  %v317_v31 = vld [vmem:[%s2388_s20 + $0x50] sm:$0xff]  ;;  %v318_v32 = vld [vmem:[%s2388_s20 + $0x58] sm:$0xff] }
  0x15   : > { %2023 = vmatprep.mubr.msk.bf16.mxu0 %vm2305_vm0, %v2304_v1  ;;  %520 = vperm.xlu0 %2282, %v473_v14   ;;  %v324_v30 = vpack.c.bf16 %v316_v29, %v315_v28  ;;  %v325_v33 = vpack.c.bf16 %v318_v32, %v317_v31  ;;  %v319_v34 = vld [vmem:[%s2388_s20 + $0x60] sm:$0xff] }
  0x16   : > { %525 = vperm.xlu1 %2283, %v474_v15   ;;  %v326_v35 = vpack.c.bf16 %v319_v34, %v319_v34  ;;  %2048 = vmatpush3.bf16.msra.mxu0 %v620_v37  ;;  %v1898_v14 = vld [vmem:[%s2845_s4 + $0x4] sm:$0x3]  ;;  %v585_v32 = vld [vmem:[%s2845_s4] sm:$0x3] }
  0x17   : > { %2091 = vmatprep.subr.bf16.mxu0 %v2304_v1 }
  0x19   : > { %530 = vperm.xlu0 %2282, %v475_v17  }
  0x1a   : > { %480 = vperm.xlu1 %2283, %v465_v18  }
  0x1c   : > { %2024 = vmatmul.mubr.msk.bf16.gmra.mrb[4].mxu0 %vm342_vm1, %v321_v16 }
  0x1d   : > { %2027 = vmatprep.mubr.msk.bf16.mxu0 %vm2305_vm0, %v2304_v1  ;;  %485 = vperm.xlu0 %2282, %v466_v21   ;;  %v819_v21 = vsel %vm618_vm2, %v1898_v14, 0 }
  0x1e   : > { %535 = vperm.xlu1 %2283, %v476_v22  }
  0x21   : > { %540 = vperm.xlu0 %2282, %v477_v24  }
  0x24   : > { %2028 = vmatmul.mubr.msk.bf16.gmra.mrb[8].mxu0 %vm342_vm1, %v322_v23 }
  0x25   : > { %2031 = vmatprep.mubr.msk.bf16.mxu0 %vm2305_vm0, %v2304_v1 }
  0x2c   : > { %2032 = vmatmul.mubr.msk.bf16.gmra.mrb[12].mxu0 %vm342_vm1, %v323_v27 }
  0x2d   : > { %2035 = vmatprep.mubr.msk.bf16.mxu0 %vm2305_vm0, %v2304_v1 }
  0x34   : > { %2036 = vmatmul.mubr.msk.bf16.gmra.mrb[16].mxu0 %vm342_vm1, %v324_v30 }
  0x35   : > { %2039 = vmatprep.mubr.msk.bf16.mxu0 %vm2305_vm0, %v2304_v1 }
  0x3c   : > { %2040 = vmatmul.mubr.msk.bf16.gmra.mrb[20].mxu0 %vm342_vm1, %v325_v33 }
  0x3d   : > { %2043 = vmatprep.mubr.msk.bf16.mxu0 %vm2305_vm0, %v2304_v1 }
  0x44   : > { %2044 = vmatmul.mubr.msk.bf16.gmra.mrb[24].mxu0 %vm342_vm1, %v326_v35  ;;  %v1910_v35 = vld [vmem:[%s2845_s4 + $0x8] sm:$0x3] }
  0x45   : > { %2049 = vmatprep.mubr.msk.bf16.mxu0 %vm2305_vm0, %v2304_v1 }
  0x88   : > { %v491_v38 = vpop.permute.xlu0 %490  ;;  %v501_v39 = vpop.permute.xlu1 %500 }
  0x8c   : > { %v496_v40 = vpop.permute.xlu0 %495  ;;  %v506_v41 = vpop.permute.xlu1 %505 }
  0x90   : > { %v2457_v42 = vpop.permute.xlu0 %510  ;;  %v2459_v43 = vpop.permute.xlu1 %515 }
  0x94   : > { %v2461_v44 = vpop.permute.xlu0 %520 }
  0x95   : > { %v2463_v45 = vpop.permute.xlu1 %525 }
  0x98   : > { %v2470_v47 = vpop.permute.xlu0 %530 }
  0x99   : > { %v481_v52 = vpop.permute.xlu1 %480 }
  0x9c   : > { %v486_v56 = vpop.permute.xlu0 %485 }
  0xe7   : > { %v398_v48 = vpop.f32.mrb[0].mxu0 }
  0xe8   : > { %v399_v49 = vadd.f32 %v2468_v46, %v398_v48  ;;  %v2021_v50 = vpop.f32.mrb[1].mxu0 }
  0xe9   : > { %v401_v51 = vpop.f32.mrb[2].mxu0 }
  0xea   : > { %v452_v53 = vmax.f32 %v399_v49, 0.0  ;;  %v402_v54 = vadd.f32 %v2468_v46, %v401_v51  ;;  %v2022_v55 = vpop.f32.mrb[3].mxu0 }
  0xec   : > { %v453_v57 = vmax.f32 %v402_v54, 0.0  ;;  %v543_v58 = vmul.f32 %v481_v52, %v452_v53 }
  0xee   : > { %557 = vst.msk [vmem:[#allocation2] sm:$0xff] %vm556_vm3, %v543_v58  ;;  %v544_v59 = vmul.f32 %v486_v56, %v453_v57 }
  0xef   : > { %v406_v60 = vpop.f32.mrb[4].mxu0 }
  0xf0   : > { %558 = vst.msk [vmem:[#allocation2 + $0x8] sm:$0xff] %vm556_vm3, %v544_v59  ;;  %v407_v61 = vadd.f32 %v2468_v46, %v406_v60  ;;  %v2025_v62 = vpop.f32.mrb[5].mxu0 }
  0xf1   : > { %v409_v63 = vpop.f32.mrb[6].mxu0 }
  0xf2   : > { %v454_v0 = vmax.f32 %v407_v61, 0.0  ;;  %v410_v2 = vadd.f32 %v2468_v46, %v409_v63  ;;  %v2026_v3 = vpop.f32.mrb[7].mxu0 }
  0xf4   : > { %v545_v4 = vmul.f32 %v491_v38, %v454_v0  ;;  %v455_v5 = vmax.f32 %v410_v2, 0.0 }
  0xf6   : > { %559 = vst.msk [vmem:[#allocation2 + $0x10] sm:$0xff] %vm556_vm3, %v545_v4  ;;  %v546_v6 = vmul.f32 %v496_v40, %v455_v5 }
  0xf7   : > { %v414_v7 = vpop.f32.mrb[8].mxu0  ;;  %v586_v17 = vld [vmem:[#allocation2 + $0x1] sm:$0xff] }
  0xf8   : > { %560 = vst.msk [vmem:[#allocation2 + $0x18] sm:$0xff] %vm556_vm3, %v546_v6  ;;  %v415_v8 = vadd.f32 %v2468_v46, %v414_v7  ;;  %v2029_v9 = vpop.f32.mrb[9].mxu0  ;;  %v786_v38 = vld [vmem:[#allocation2 + $0x2] sm:$0xff] }
  0xf9   : > { %v417_v10 = vpop.f32.mrb[10].mxu0 }
  0xfa   : > { %v456_v11 = vmax.f32 %v415_v8, 0.0  ;;  %v418_v12 = vadd.f32 %v2468_v46, %v417_v10  ;;  %v2030_v13 = vpop.f32.mrb[11].mxu0 }
  0xfc   : > { %v547_v15 = vmul.f32 %v501_v39, %v456_v11  ;;  %v457_v16 = vmax.f32 %v418_v12, 0.0  ;;  %v536_v12 = vpop.permute.xlu1 %535 }
  0xfd   : > { %v587_v18 = vld [vmem:[#allocation2 + $0x9] sm:$0xff] }
  0xfe   : > { %561 = vst.msk [vmem:[#allocation2 + $0x20] sm:$0xff] %vm556_vm3, %v547_v15  ;;  %v548_v19 = vmul.f32 %v506_v41, %v457_v16  ;;  %v596_v20 = vpack.c.bf16 %v587_v18, %v586_v17  ;;  %v2487_v23 = vld [vmem:[#allocation2 + $0xa] sm:$0xff]  ;;  %v711_v41 = vsel %vm618_vm2, %v585_v32, 0 }
  0xff   : > { %v422_v22 = vpop.f32.mrb[12].mxu0  ;;  %v2489_v24 = vld [vmem:[#allocation2 + $0x12] sm:$0xff]  ;;  %v796_v48 = vpack.c.bf16 %v2487_v23, %v786_v38 }
 0x100   : > { %562 = vst.msk [vmem:[#allocation2 + $0x28] sm:$0xff] %vm556_vm3, %v548_v19  ;;  %v423_v25 = vadd.f32 %v2468_v46, %v422_v22  ;;  %v2033_v26 = vpop.f32.mrb[13].mxu0  ;;  %2050 = vmatmul.mubr.msk.bf16.vlgmr.msra.gmra.mrb[28].mxu0 %vm556_vm3, %v596_v20  ;;  %v914_v27 = vpack.c.bf16 %v2489_v24, %v2487_v23  ;;  %v588_v36 = vld [vmem:[#allocation2 + $0x11] sm:$0xff] }
 0x101   : > { %v425_v28 = vpop.f32.mrb[14].mxu0  ;;  %2092 = vmatpush3.bf16.msra.mxu0 %v819_v21  ;;  %2093 = vmatprep.mubr.msk.bf16.mxu0 %vm2305_vm0, %v2304_v1 }
 0x102   : > { %v458_v29 = vmax.f32 %v423_v25, 0.0  ;;  %v426_v30 = vadd.f32 %v2468_v46, %v425_v28  ;;  %v2034_v31 = vpop.f32.mrb[15].mxu0  ;;  %2135 = vmatprep.subr.bf16.mxu0 %v2304_v1 }
 0x104   : > { %v549_v33 = vmul.f32 %v2457_v42, %v458_v29  ;;  %v459_v34 = vmax.f32 %v426_v30, 0.0  ;;  %v541_v29 = vpop.permute.xlu0 %540 }
 0x105   : > { %v589_v37 = vld [vmem:[#allocation2 + $0x19] sm:$0xff] }
 0x106   : > { %563 = vst.msk [vmem:[#allocation2 + $0x30] sm:$0xff] %vm556_vm3, %v549_v33  ;;  %v550_v39 = vmul.f32 %v2459_v43, %v459_v34  ;;  %v597_v40 = vpack.c.bf16 %v589_v37, %v588_v36  ;;  %v2511_v50 = vld [vmem:[#allocation2 + $0x1a] sm:$0xff]  ;;  %v1055_v43 = vsel %vm618_vm2, %v1910_v35, 0  ;;  %v571_v34 = vld [vmem:[#allocation2 + $0x8] sm:$0xff]  ;;  %v1904_v36 = vld [vmem:[%s2845_s4 + $0x6] sm:$0x3] }
 0x107   : > { %v430_v49 = vpop.f32.mrb[16].mxu0  ;;  %v2513_v42 = vld [vmem:[#allocation2 + $0x22] sm:$0xff]  ;;  %v797_v0 = vpack.c.bf16 %v2511_v50, %v2489_v24 }
 0x108   : > { %564 = vst.msk [vmem:[#allocation2 + $0x38] sm:$0xff] %vm556_vm3, %v550_v39  ;;  %v431_v51 = vadd.f32 %v2468_v46, %v430_v49  ;;  %v2037_v52 = vpop.f32.mrb[17].mxu0  ;;  %2054 = vmatmul.mubr.msk.bf16.vlgmr.msra.gmra.mrb[0].mxu1 %vm556_vm3, %v597_v40  ;;  %2094 = vmatmul.mubr.msk.bf16.vlgmr.msra.gmra.mrb[32].mxu0 %vm556_vm3, %v796_v48  ;;  %v915_v53 = vpack.c.bf16 %v2513_v42, %v2511_v50  ;;  %v590_v60 = vld [vmem:[#allocation2 + $0x21] sm:$0xff]  ;;  %v937_v40 = vsel %vm618_vm2, %v1904_v36, 0  ;;  %v1023_v48 = vld [vmem:[#allocation2 + $0x13] sm:$0xff] }
 0x109   : > { %2070 = vmatpush3.bf16.msra.mxu1 %v711_v41  ;;  %v433_v54 = vpop.f32.mrb[18].mxu0  ;;  %2057 = vmatprep.mubr.msk.bf16.mxu1 %vm2305_vm0, %v2304_v1  ;;  %v570_v37 = vld [vmem:[#allocation2] sm:$0xff]  ;;  %v573_v41 = vld [vmem:[#allocation2 + $0x18] sm:$0xff]  ;;  %v1922_v49 = vld [vmem:[%s2845_s4 + $0xc] sm:$0x3] }
 0x10a   : > { %v460_v55 = vmax.f32 %v431_v51, 0.0  ;;  %v434_v56 = vadd.f32 %v2468_v46, %v433_v54  ;;  %v2038_v57 = vpop.f32.mrb[19].mxu0  ;;  %2097 = vmatprep.mubr.msk.bf16.mxu0 %vm2305_vm0, %v2304_v1  ;;  %2113 = vmatprep.subr.bf16.mxu1 %v2304_v1  ;;  %v580_v38 = vpack.c.bf16 %v571_v34, %v570_v37  ;;  %v572_v51 = vld [vmem:[#allocation2 + $0x10] sm:$0xff]  ;;  %v1496_v37 = vld [vmem:[#allocation2 + $0x26] sm:$0xff] }
 0x10b   : > { %2136 = vmatpush3.bf16.msra.mxu0 %v1055_v43  ;;  %v1022_v52 = vld [vmem:[#allocation2 + $0xb] sm:$0xff]  ;;  %v581_v43 = vpack.c.bf16 %v573_v41, %v572_v51  ;;  %v1025_v57 = vld [vmem:[#allocation2 + $0x23] sm:$0xff] }
 0x10c   : > { %v551_v58 = vmul.f32 %v2461_v44, %v460_v55  ;;  %v461_v59 = vmax.f32 %v434_v56, 0.0  ;;  %2179 = vmatprep.subr.bf16.mxu0 %v2304_v1  ;;  %v1032_v54 = vpack.c.bf16 %v1023_v48, %v1022_v52  ;;  %v1291_v55 = vsel %vm618_vm2, %v1922_v49, 0  ;;  %v575_v56 = vld [vmem:[#allocation2 + $0x28] sm:$0xff] }
 0x10d   : > { %v591_v61 = vld [vmem:[#allocation2 + $0x29] sm:$0xff] }
 0x10e   : > { %565 = vst.msk [vmem:[#allocation2 + $0x40] sm:$0xff] %vm556_vm3, %v551_v58  ;;  %v552_v62 = vmul.f32 %v2463_v45, %v461_v59  ;;  %v598_v63 = vpack.c.bf16 %v591_v61, %v590_v60  ;;  %v2534_v3 = vld [vmem:[#allocation2 + $0x2a] sm:$0xff]  ;;  %v574_v58 = vld [vmem:[#allocation2 + $0x20] sm:$0xff] }
 0x10f   : > { %v438_v2 = vpop.f32.mrb[20].mxu0  ;;  %v2536_v4 = vld [vmem:[#allocation2 + $0x32] sm:$0xff]  ;;  %v798_v17 = vpack.c.bf16 %v2534_v3, %v2513_v42  ;;  %v1024_v59 = vld [vmem:[#allocation2 + $0x1b] sm:$0xff]  ;;  %v582_v60 = vpack.c.bf16 %v575_v56, %v574_v58 }
 0x110   : > { %566 = vst.msk [vmem:[#allocation2 + $0x48] sm:$0xff] %vm556_vm3, %v552_v62  ;;  %v439_v44 = vadd.f32 %v2468_v46, %v438_v2  ;;  %v2041_v5 = vpop.f32.mrb[21].mxu0  ;;  %2058 = vmatmul.mubr.msk.bf16.gmra.mrb[4].mxu1 %vm556_vm3, %v598_v63  ;;  %2098 = vmatmul.mubr.msk.bf16.gmra.mrb[36].mxu0 %vm556_vm3, %v797_v0  ;;  %v916_v45 = vpack.c.bf16 %v2536_v4, %v2534_v3  ;;  %v592_v13 = vld [vmem:[#allocation2 + $0x31] sm:$0xff] }
 0x111   : > { %v441_v6 = vpop.f32.mrb[22].mxu0  ;;  %2061 = vmatprep.mubr.msk.bf16.mxu1 %vm2305_vm0, %v2304_v1  ;;  %2101 = vmatprep.mubr.msk.bf16.mxu0 %vm2305_vm0, %v2304_v1  ;;  %v1033_v61 = vpack.c.bf16 %v1025_v57, %v1024_v59  ;;  %v577_v62 = vld [vmem:[#allocation2 + $0x38] sm:$0xff]  ;;  %v576_v0 = vld [vmem:[#allocation2 + $0x30] sm:$0xff] }
 0x112   : > { %v462_v7 = vmax.f32 %v439_v44, 0.0  ;;  %v442_v8 = vadd.f32 %v2468_v46, %v441_v6  ;;  %v2042_v9 = vpop.f32.mrb[23].mxu0  ;;  %v1027_v63 = vld [vmem:[#allocation2 + $0x33] sm:$0xff]  ;;  %v1026_v2 = vld [vmem:[#allocation2 + $0x2b] sm:$0xff]  ;;  %v583_v44 = vpack.c.bf16 %v577_v62, %v576_v0 }
 0x113   : > { %v1034_v5 = vpack.c.bf16 %v1027_v63, %v1026_v2  ;;  %v1262_v42 = vld [vmem:[#allocation2 + $0x34] sm:$0xff]  ;;  %v1378_v62 = vld [vmem:[#allocation2 + $0x25] sm:$0xff] }
 0x114   : > { %v553_v10 = vmul.f32 %v2470_v47, %v462_v7  ;;  %v463_v11 = vmax.f32 %v442_v8, 0.0  ;;  %v1497_v36 = vld [vmem:[#allocation2 + $0x2e] sm:$0xff]  ;;  %v1498_v41 = vld [vmem:[#allocation2 + $0x36] sm:$0xff] }
 0x115   : > { %v593_v14 = vld [vmem:[#allocation2 + $0x39] sm:$0xff] }
 0x116   : > { %567 = vst.msk [vmem:[#allocation2 + $0x50] sm:$0xff] %vm556_vm3, %v553_v10  ;;  %v554_v15 = vmul.f32 %v536_v12, %v463_v11  ;;  %v599_v16 = vpack.c.bf16 %v593_v14, %v592_v13  ;;  %v2553_v19 = vld [vmem:[#allocation2 + $0x3a] sm:$0xff]  ;;  %v1916_v13 = vld [vmem:[%s2845_s4 + $0xa] sm:$0x3] }
 0x117   : > { %v446_v18 = vpop.f32.mrb[24].mxu0  ;;  %v2555_v20 = vld [vmem:[#allocation2 + $0x42] sm:$0xff]  ;;  %v799_v33 = vpack.c.bf16 %v2553_v19, %v2536_v4  ;;  %v1376_v57 = vld [vmem:[#allocation2 + $0x15] sm:$0xff] }
 0x118   : > { %568 = vst.msk [vmem:[#allocation2 + $0x58] sm:$0xff] %vm556_vm3, %v554_v15  ;;  %v447_v47 = vadd.f32 %v2468_v46, %v446_v18  ;;  %2062 = vmatmul.mubr.msk.bf16.gmra.mrb[8].mxu1 %vm556_vm3, %v599_v16  ;;  %2102 = vmatmul.mubr.msk.bf16.gmra.mrb[40].mxu0 %vm556_vm3, %v798_v17  ;;  %v917_v21 = vpack.c.bf16 %v2555_v20, %v2553_v19  ;;  %v2045_v22 = vpop.f32.mrb[25].mxu0  ;;  %v594_v46 = vld [vmem:[#allocation2 + $0x41] sm:$0xff]  ;;  %v1173_v16 = vsel %vm618_vm2, %v1916_v13, 0  ;;  %v1934_v18 = vld [vmem:[%s2845_s4 + $0x10] sm:$0x3] }
 0x119   : > { %2065 = vmatprep.mubr.msk.bf16.mxu1 %vm2305_vm0, %v2304_v1  ;;  %2105 = vmatprep.mubr.msk.bf16.mxu0 %vm2305_vm0, %v2304_v1  ;;  %v449_v25 = vpop.f32.mrb[26].mxu0  ;;  %v579_v6 = vld [vmem:[#allocation2 + $0x48] sm:$0xff]  ;;  %v578_v8 = vld [vmem:[#allocation2 + $0x40] sm:$0xff]  ;;  %v1527_v24 = vsel %vm618_vm2, %v1934_v18, 0  ;;  %v1380_v2 = vld [vmem:[#allocation2 + $0x35] sm:$0xff] }
 0x11a   : > { %v464_v26 = vmax.f32 %v447_v47, 0.0  ;;  %v2046_v28 = vpop.f32.mrb[27].mxu0  ;;  %v1029_v7 = vld [vmem:[#allocation2 + $0x43] sm:$0xff]  ;;  %v1028_v9 = vld [vmem:[#allocation2 + $0x3b] sm:$0xff]  ;;  %v584_v10 = vpack.c.bf16 %v579_v6, %v578_v8 }
 0x11b   : > { %v1035_v11 = vpack.c.bf16 %v1029_v7, %v1028_v9  ;;  %v1259_v17 = vld [vmem:[#allocation2 + $0x1c] sm:$0xff]  ;;  %v1258_v47 = vld [vmem:[#allocation2 + $0x14] sm:$0xff]  ;;  %v1260_v22 = vld [vmem:[#allocation2 + $0x24] sm:$0xff] }
 0x11c   : > { %v555_v30 = vmul.f32 %v541_v29, %v464_v26  ;;  %v1268_v23 = vpack.c.bf16 %v1259_v17, %v1258_v47  ;;  %v1263_v50 = vld [vmem:[#allocation2 + $0x3c] sm:$0xff]  ;;  %v1151_v34 = vpack.c.bf16 %v1260_v22, %v1259_v17  ;;  %v1500_v52 = vld [vmem:[#allocation2 + $0x46] sm:$0xff] }
 0x11d   : > { %v595_v31 = vld [vmem:[#allocation2 + $0x49] sm:$0xff]  ;;  %v1381_v0 = vld [vmem:[#allocation2 + $0x3d] sm:$0xff] }
 0x11e   : > { %569 = vst.msk [vmem:[#allocation2 + $0x60] sm:$0xff] %vm556_vm3, %v555_v30  ;;  %v600_v32 = vpack.c.bf16 %v595_v31, %v594_v46  ;;  %v2576_v35 = vld [vmem:[#allocation2 + $0x4a] sm:$0xff] }
 0x11f   : > { %v800_v39 = vpack.c.bf16 %v2576_v35, %v2555_v20  ;;  %v1031_v12 = vld [vmem:[#allocation2 + $0x53] sm:$0xff]  ;;  %v1030_v14 = vld [vmem:[#allocation2 + $0x4b] sm:$0xff] }
 0x120   : > { %2066 = vmatmul.mubr.msk.bf16.gmra.mrb[12].mxu1 %vm556_vm3, %v600_v32  ;;  %2106 = vmatmul.mubr.msk.bf16.gmra.mrb[44].mxu0 %vm556_vm3, %v799_v33  ;;  %v1036_v15 = vpack.c.bf16 %v1031_v12, %v1030_v14  ;;  %v913_v3 = vld [vmem:[#allocation2 + $0x52] sm:$0xff]  ;;  %v1928_v20 = vld [vmem:[%s2845_s4 + $0xe] sm:$0x3]  ;;  %v1495_v32 = vld [vmem:[#allocation2 + $0x1e] sm:$0xff] }
 0x121   : > { %2071 = vmatprep.mubr.msk.bf16.mxu1 %vm2305_vm0, %v2304_v1  ;;  %2109 = vmatprep.mubr.msk.bf16.mxu0 %vm2305_vm0, %v2304_v1  ;;  %v1265_v4 = vld [vmem:[#allocation2 + $0x4c] sm:$0xff]  ;;  %v918_v26 = vpack.c.bf16 %v913_v3, %v2576_v35  ;;  %v1266_v29 = vld [vmem:[#allocation2 + $0x54] sm:$0xff]  ;;  %v1409_v31 = vsel %vm618_vm2, %v1928_v20, 0 }
 0x122   : > { %v1494_v33 = vld [vmem:[#allocation2 + $0x16] sm:$0xff]  ;;  %v1501_v51 = vld [vmem:[#allocation2 + $0x4e] sm:$0xff]  ;;  %v1382_v6 = vld [vmem:[#allocation2 + $0x45] sm:$0xff] }
 0x123   : > { %v1504_v35 = vpack.c.bf16 %v1495_v32, %v1494_v33  ;;  %v1502_v58 = vld [vmem:[#allocation2 + $0x56] sm:$0xff] }
 0x124   : > { %v1384_v9 = vld [vmem:[#allocation2 + $0x55] sm:$0xff] }
 0x125   : > { %v1267_v19 = vld [vmem:[#allocation2 + $0x5c] sm:$0xff] }
 0x126   : > { %v1272_v46 = vpack.c.bf16 %v1267_v19, %v1266_v29  ;;  %v1503_v56 = vld [vmem:[#allocation2 + $0x5e] sm:$0xff] }
 0x127   : > { %v1385_v8 = vld [vmem:[#allocation2 + $0x5d] sm:$0xff] }
 0x128   : > { %2072 = vmatmul.mubr.msk.bf16.vlgmr.msra.gmra.mrb[16].mxu1 %vm556_vm3, %v580_v38  ;;  %2110 = vmatmul.mubr.msk.bf16.gmra.mrb[48].mxu0 %vm556_vm3, %v800_v39  ;;  %v1505_v39 = vpack.c.bf16 %v1497_v36, %v1496_v37 }
 0x129   : > { %2114 = vmatpush3.bf16.msra.mxu1 %v937_v40  ;;  %2075 = vmatprep.mubr.msk.bf16.mxu1 %vm2305_vm0, %v2304_v1  ;;  %v1499_v40 = vld [vmem:[#allocation2 + $0x3e] sm:$0xff] }
 0x12a   : > { %2137 = vmatprep.mubr.msk.bf16.mxu0 %vm2305_vm0, %v2304_v1  ;;  %2157 = vmatprep.subr.bf16.mxu1 %v2304_v1  ;;  %v1506_v49 = vpack.c.bf16 %v1499_v40, %v1498_v41 }
 0x130   : > { %2076 = vmatmul.mubr.msk.bf16.gmra.mrb[20].mxu1 %vm556_vm3, %v581_v43  ;;  %2138 = vmatmul.mubr.msk.bf16.vlgmr.msra.gmra.mrb[52].mxu0 %vm556_vm3, %v1032_v54  ;;  %v1154_v43 = vpack.c.bf16 %v1266_v29, %v1265_v4  ;;  %v1507_v54 = vpack.c.bf16 %v1501_v51, %v1500_v52 }
 0x131   : > { %2079 = vmatprep.mubr.msk.bf16.mxu1 %vm2305_vm0, %v2304_v1  ;;  %2141 = vmatprep.mubr.msk.bf16.mxu0 %vm2305_vm0, %v2304_v1 }
 0x132   : > { %2180 = vmatpush3.bf16.msra.mxu0 %v1291_v55  ;;  %v1377_v55 = vld [vmem:[#allocation2 + $0x1d] sm:$0xff] }
 0x133   : > { %2223 = vmatprep.subr.bf16.mxu0 %v2304_v1  ;;  %v1386_v59 = vpack.c.bf16 %v1377_v55, %v1376_v57 }
 0x138   : > { %2080 = vmatmul.mubr.msk.bf16.gmra.mrb[24].mxu1 %vm556_vm3, %v582_v60  ;;  %2142 = vmatmul.mubr.msk.bf16.gmra.mrb[56].mxu0 %vm556_vm3, %v1033_v61  ;;  %v1508_v60 = vpack.c.bf16 %v1503_v56, %v1502_v58  ;;  %v1379_v61 = vld [vmem:[#allocation2 + $0x2d] sm:$0xff] }
 0x139   : > { %2083 = vmatprep.mubr.msk.bf16.mxu1 %vm2305_vm0, %v2304_v1  ;;  %2145 = vmatprep.mubr.msk.bf16.mxu0 %vm2305_vm0, %v2304_v1  ;;  %v1387_v63 = vpack.c.bf16 %v1379_v61, %v1378_v62 }
 0x140   : > { %2084 = vmatmul.mubr.msk.bf16.gmra.mrb[28].mxu1 %vm556_vm3, %v583_v44  ;;  %2146 = vmatmul.mubr.msk.bf16.gmra.mrb[60].mxu0 %vm556_vm3, %v1034_v5  ;;  %v1388_v44 = vpack.c.bf16 %v1381_v0, %v1380_v2  ;;  %v1383_v5 = vld [vmem:[#allocation2 + $0x4d] sm:$0xff] }
 0x141   : > { %2087 = vmatprep.mubr.msk.bf16.mxu1 %vm2305_vm0, %v2304_v1  ;;  %2149 = vmatprep.mubr.msk.bf16.mxu0 %vm2305_vm0, %v2304_v1  ;;  %v1389_v7 = vpack.c.bf16 %v1383_v5, %v1382_v6 }
 0x148   : > { %2088 = vmatmul.mubr.msk.bf16.gmra.mrb[32].mxu1 %vm556_vm3, %v584_v10  ;;  %2150 = vmatmul.mubr.msk.bf16.gmra.mrb[64].mxu0 %vm556_vm3, %v1035_v11  ;;  %v1390_v10 = vpack.c.bf16 %v1385_v8, %v1384_v9 }
 0x149   : > { %2115 = vmatprep.mubr.msk.bf16.mxu1 %vm2305_vm0, %v2304_v1  ;;  %2153 = vmatprep.mubr.msk.bf16.mxu0 %vm2305_vm0, %v2304_v1 }
 0x150   : > { %2116 = vmatmul.mubr.msk.bf16.vlgmr.msra.gmra.mrb[36].mxu1 %vm556_vm3, %v914_v27  ;;  %2154 = vmatmul.mubr.msk.bf16.gmra.mrb[68].mxu0 %vm556_vm3, %v1036_v15  ;;  %v1261_v27 = vld [vmem:[#allocation2 + $0x2c] sm:$0xff]  ;;  %v1644_v15 = vld [vmem:[%s2847_s6] sm:$0x3] }
 0x151   : > { %2158 = vmatpush3.bf16.msra.mxu1 %v1173_v16  ;;  %2119 = vmatprep.mubr.msk.bf16.mxu1 %vm2305_vm0, %v2304_v1  ;;  %v1269_v25 = vpack.c.bf16 %v1261_v27, %v1260_v22  ;;  %v1152_v38 = vpack.c.bf16 %v1262_v42, %v1261_v27  ;;  %v1668_v16 = vsel %vm618_vm2, %v1644_v15, 0 }
 0x152   : > { %2181 = vmatprep.mubr.msk.bf16.mxu0 %vm2305_vm0, %v2304_v1  ;;  %2201 = vmatprep.subr.bf16.mxu1 %v2304_v1 }
 0x158   : > { %2120 = vmatmul.mubr.msk.bf16.gmra.mrb[40].mxu1 %vm556_vm3, %v915_v53  ;;  %2182 = vmatmul.mubr.msk.bf16.vlgmr.msra.gmra.mrb[72].mxu0 %vm556_vm3, %v1268_v23  ;;  %v1270_v53 = vpack.c.bf16 %v1263_v50, %v1262_v42 }
 0x159   : > { %2123 = vmatprep.mubr.msk.bf16.mxu1 %vm2305_vm0, %v2304_v1  ;;  %2185 = vmatprep.mubr.msk.bf16.mxu0 %vm2305_vm0, %v2304_v1 }
 0x15a   : > { %2224 = vmatpush3.bf16.msra.mxu0 %v1527_v24 }
 0x160   : > { %2124 = vmatmul.mubr.msk.bf16.gmra.mrb[44].mxu1 %vm556_vm3, %v916_v45  ;;  %2186 = vmatmul.mubr.msk.bf16.gmra.mrb[76].mxu0 %vm556_vm3, %v1269_v25  ;;  %v1264_v45 = vld [vmem:[#allocation2 + $0x44] sm:$0xff] }
 0x161   : > { %2127 = vmatprep.mubr.msk.bf16.mxu1 %vm2305_vm0, %v2304_v1  ;;  %2189 = vmatprep.mubr.msk.bf16.mxu0 %vm2305_vm0, %v2304_v1  ;;  %v1271_v28 = vpack.c.bf16 %v1265_v4, %v1264_v45  ;;  %v1153_v48 = vpack.c.bf16 %v1264_v45, %v1263_v50 }
 0x168   : > { %2128 = vmatmul.mubr.msk.bf16.gmra.mrb[48].mxu1 %vm556_vm3, %v917_v21  ;;  %2190 = vmatmul.mubr.msk.bf16.gmra.mrb[80].mxu0 %vm556_vm3, %v1270_v53  ;;  %v1140_v21 = vld [vmem:[#allocation2 + $0xc] sm:$0xff] }
 0x169   : > { %2131 = vmatprep.mubr.msk.bf16.mxu1 %vm2305_vm0, %v2304_v1  ;;  %2193 = vmatprep.mubr.msk.bf16.mxu0 %vm2305_vm0, %v2304_v1  ;;  %v1150_v30 = vpack.c.bf16 %v1258_v47, %v1140_v21 }
 0x170   : > { %2132 = vmatmul.mubr.msk.bf16.gmra.mrb[52].mxu1 %vm556_vm3, %v918_v26  ;;  %2194 = vmatmul.mubr.msk.bf16.gmra.mrb[84].mxu0 %vm556_vm3, %v1271_v28 }
 0x171   : > { %2159 = vmatprep.mubr.msk.bf16.mxu1 %vm2305_vm0, %v2304_v1  ;;  %2197 = vmatprep.mubr.msk.bf16.mxu0 %vm2305_vm0, %v2304_v1 }
 0x178   : > { %2160 = vmatmul.mubr.msk.bf16.vlgmr.msra.gmra.mrb[56].mxu1 %vm556_vm3, %v1150_v30  ;;  %2198 = vmatmul.mubr.msk.bf16.gmra.mrb[88].mxu0 %vm556_vm3, %v1272_v46 }
 0x179   : > { %2202 = vmatpush3.bf16.msra.mxu1 %v1409_v31  ;;  %2163 = vmatprep.mubr.msk.bf16.mxu1 %vm2305_vm0, %v2304_v1 }
 0x17a   : > { %2225 = vmatprep.mubr.msk.bf16.mxu0 %vm2305_vm0, %v2304_v1  ;;  %2245 = vmatprep.subr.bf16.mxu1 %v2304_v1 }
 0x180   : > { %2164 = vmatmul.mubr.msk.bf16.gmra.mrb[60].mxu1 %vm556_vm3, %v1151_v34  ;;  %2226 = vmatmul.mubr.msk.bf16.vlgmr.msra.gmra.mrb[92].mxu0 %vm556_vm3, %v1504_v35 }
 0x181   : > { %2167 = vmatprep.mubr.msk.bf16.mxu1 %vm2305_vm0, %v2304_v1  ;;  %2229 = vmatprep.mubr.msk.bf16.mxu0 %vm2305_vm0, %v2304_v1 }
 0x188   : > { %2168 = vmatmul.mubr.msk.bf16.gmra.mrb[64].mxu1 %vm556_vm3, %v1152_v38  ;;  %2230 = vmatmul.mubr.msk.bf16.gmra.mrb[96].mxu0 %vm556_vm3, %v1505_v39 }
 0x189   : > { %2171 = vmatprep.mubr.msk.bf16.mxu1 %vm2305_vm0, %v2304_v1  ;;  %2233 = vmatprep.mubr.msk.bf16.mxu0 %vm2305_vm0, %v2304_v1 }
 0x190   : > { %2172 = vmatmul.mubr.msk.bf16.gmra.mrb[68].mxu1 %vm556_vm3, %v1153_v48  ;;  %2234 = vmatmul.mubr.msk.bf16.gmra.mrb[100].mxu0 %vm556_vm3, %v1506_v49 }
 0x191   : > { %2175 = vmatprep.mubr.msk.bf16.mxu1 %vm2305_vm0, %v2304_v1  ;;  %2237 = vmatprep.mubr.msk.bf16.mxu0 %vm2305_vm0, %v2304_v1 }
 0x198   : > { %2176 = vmatmul.mubr.msk.bf16.gmra.mrb[72].mxu1 %vm556_vm3, %v1154_v43  ;;  %2238 = vmatmul.mubr.msk.bf16.gmra.mrb[104].mxu0 %vm556_vm3, %v1507_v54 }
 0x199   : > { %2203 = vmatprep.mubr.msk.bf16.mxu1 %vm2305_vm0, %v2304_v1  ;;  %2241 = vmatprep.mubr.msk.bf16.mxu0 %vm2305_vm0, %v2304_v1 }
 0x1a0   : > { %2204 = vmatmul.mubr.msk.bf16.vlgmr.msra.gmra.mrb[76].mxu1 %vm556_vm3, %v1386_v59  ;;  %2242 = vmatmul.mubr.msk.bf16.gmra.mrb[108].mxu0 %vm556_vm3, %v1508_v60 }
 0x1a1   : > { %2207 = vmatprep.mubr.msk.bf16.mxu1 %vm2305_vm0, %v2304_v1  ;;  %2246 = vmatpush3.bf16.msra.mxu1 %v1668_v16 }
 0x1a8   : > { %2208 = vmatmul.mubr.msk.bf16.gmra.mrb[80].mxu1 %vm556_vm3, %v1387_v63 }
 0x1a9   : > { %2211 = vmatprep.mubr.msk.bf16.mxu1 %vm2305_vm0, %v2304_v1 }
 0x1b0   : > { %2212 = vmatmul.mubr.msk.bf16.gmra.mrb[84].mxu1 %vm556_vm3, %v1388_v44 }
 0x1b1   : > { %2215 = vmatprep.mubr.msk.bf16.mxu1 %vm2305_vm0, %v2304_v1 }
 0x1b8   : > { %2216 = vmatmul.mubr.msk.bf16.gmra.mrb[88].mxu1 %vm556_vm3, %v1389_v7 }
 0x1b9   : > { %2219 = vmatprep.mubr.msk.bf16.mxu1 %vm2305_vm0, %v2304_v1 }
 0x1c0   : > { %2220 = vmatmul.mubr.msk.bf16.gmra.mrb[92].mxu1 %vm556_vm3, %v1390_v10 }
 0x1c1   : > { %2247 = vmatprep.mubr.msk.bf16.mxu1 %vm2305_vm0, %v2304_v1 }
 0x1d3   : > { %v656_v11 = vpop.f32.mrb[28].mxu0 }
 0x1d4   : > { %v2051_v12 = vpop.f32.mrb[29].mxu0 }
 0x1d5   : > { %v659_v13 = vpop.f32.mrb[30].mxu0 }
 0x1d6   : > { %v2052_v14 = vpop.f32.mrb[31].mxu0 }
 0x1db   : > { %v664_v17 = vpop.f32.mrb[0].mxu1  ;;  %v855_v18 = vpop.f32.mrb[32].mxu0 }
 0x1dc   : > { %v2055_v47 = vpop.f32.mrb[1].mxu1  ;;  %v2095_v23 = vpop.f32.mrb[33].mxu0 }
 0x1dd   : > { %v667_v24 = vpop.f32.mrb[2].mxu1  ;;  %v858_v27 = vpop.f32.mrb[34].mxu0 }
 0x1de   : > { %v2056_v22 = vpop.f32.mrb[3].mxu1  ;;  %v2096_v25 = vpop.f32.mrb[35].mxu0 }
 0x1e3   : > { %v672_v50 = vpop.f32.mrb[4].mxu1  ;;  %v863_v42 = vpop.f32.mrb[36].mxu0 }
 0x1e4   : > { %v2059_v53 = vpop.f32.mrb[5].mxu1  ;;  %v2099_v3 = vpop.f32.mrb[37].mxu0 }
 0x1e5   : > { %v675_v4 = vpop.f32.mrb[6].mxu1  ;;  %v866_v45 = vpop.f32.mrb[38].mxu0 }
 0x1e6   : > { %v2060_v26 = vpop.f32.mrb[7].mxu1  ;;  %v2100_v28 = vpop.f32.mrb[39].mxu0 }
 0x1eb   : > { %v680_v19 = vpop.f32.mrb[8].mxu1  ;;  %v871_v20 = vpop.f32.mrb[40].mxu0 }
 0x1ec   : > { %v2063_v21 = vpop.f32.mrb[9].mxu1  ;;  %v2103_v29 = vpop.f32.mrb[41].mxu0 }
 0x1ed   : > { %v683_v30 = vpop.f32.mrb[10].mxu1  ;;  %v874_v46 = vpop.f32.mrb[42].mxu0 }
 0x1ee   : > { %v2064_v31 = vpop.f32.mrb[11].mxu1  ;;  %v2104_v32 = vpop.f32.mrb[43].mxu0 }
 0x1f3   : > { %v688_v33 = vpop.f32.mrb[12].mxu1  ;;  %v879_v34 = vpop.f32.mrb[44].mxu0 }
 0x1f4   : > { %v2067_v35 = vpop.f32.mrb[13].mxu1  ;;  %v2107_v36 = vpop.f32.mrb[45].mxu0 }
 0x1f5   : > { %v691_v37 = vpop.f32.mrb[14].mxu1  ;;  %v882_v38 = vpop.f32.mrb[46].mxu0 }
 0x1f6   : > { %v2068_v39 = vpop.f32.mrb[15].mxu1  ;;  %v2108_v40 = vpop.f32.mrb[47].mxu0 }
 0x1fb   : > { %v747_v41 = vpop.f32.mrb[16].mxu1  ;;  %v887_v48 = vpop.f32.mrb[48].mxu0 }
 0x1fc   : > { %v748_v49 = vadd.f32 %v747_v41, %v656_v11  ;;  %v2073_v51 = vpop.f32.mrb[17].mxu1  ;;  %v2111_v52 = vpop.f32.mrb[49].mxu0 }
 0x1fd   : > { %v750_v43 = vpop.f32.mrb[18].mxu1  ;;  %v890_v54 = vpop.f32.mrb[50].mxu0 }
 0x1fe   : > { %v751_v55 = vadd.f32 %v750_v43, %v659_v13  ;;  %v2074_v56 = vpop.f32.mrb[19].mxu1  ;;  %v2112_v57 = vpop.f32.mrb[51].mxu0  ;;  %v894_v58 = vadd.f32 %v855_v18, %v748_v49 }
 0x200   : > { %v895_v59 = vadd.f32 %v858_v27, %v751_v55 }
 0x203   : > { %v755_v60 = vpop.f32.mrb[20].mxu1  ;;  %v1091_v61 = vpop.f32.mrb[52].mxu0 }
 0x204   : > { %v756_v62 = vadd.f32 %v755_v60, %v664_v17  ;;  %v2077_v63 = vpop.f32.mrb[21].mxu1  ;;  %v2139_v0 = vpop.f32.mrb[53].mxu0 }
 0x205   : > { %v758_v2 = vpop.f32.mrb[22].mxu1  ;;  %v1094_v44 = vpop.f32.mrb[54].mxu0 }
 0x206   : > { %v759_v5 = vadd.f32 %v758_v2, %v667_v24  ;;  %v2078_v6 = vpop.f32.mrb[23].mxu1  ;;  %v2140_v7 = vpop.f32.mrb[55].mxu0  ;;  %v896_v8 = vadd.f32 %v863_v42, %v756_v62 }
 0x208   : > { %v897_v9 = vadd.f32 %v866_v45, %v759_v5 }
 0x20b   : > { %v763_v10 = vpop.f32.mrb[24].mxu1  ;;  %v1099_v11 = vpop.f32.mrb[56].mxu0 }
 0x20c   : > { %v764_v12 = vadd.f32 %v763_v10, %v672_v50  ;;  %v2081_v13 = vpop.f32.mrb[25].mxu1  ;;  %v2143_v14 = vpop.f32.mrb[57].mxu0 }
 0x20d   : > { %v766_v15 = vpop.f32.mrb[26].mxu1  ;;  %v1102_v16 = vpop.f32.mrb[58].mxu0 }
 0x20e   : > { %v767_v18 = vadd.f32 %v766_v15, %v675_v4  ;;  %v2082_v47 = vpop.f32.mrb[27].mxu1  ;;  %v2144_v23 = vpop.f32.mrb[59].mxu0  ;;  %v898_v17 = vadd.f32 %v871_v20, %v764_v12 }
 0x210   : > { %v899_v27 = vadd.f32 %v874_v46, %v767_v18 }
 0x213   : > { %v771_v22 = vpop.f32.mrb[28].mxu1  ;;  %v1107_v25 = vpop.f32.mrb[60].mxu0 }
 0x214   : > { %v772_v53 = vadd.f32 %v771_v22, %v680_v19  ;;  %v2085_v24 = vpop.f32.mrb[29].mxu1  ;;  %v2147_v3 = vpop.f32.mrb[61].mxu0 }
 0x215   : > { %v774_v26 = vpop.f32.mrb[30].mxu1  ;;  %v1110_v42 = vpop.f32.mrb[62].mxu0 }
 0x216   : > { %v775_v45 = vadd.f32 %v774_v26, %v683_v30  ;;  %v2086_v28 = vpop.f32.mrb[31].mxu1  ;;  %v2148_v21 = vpop.f32.mrb[63].mxu0  ;;  %v900_v50 = vadd.f32 %v879_v34, %v772_v53 }
 0x218   : > { %v901_v29 = vadd.f32 %v882_v38, %v775_v45 }
 0x21b   : > { %v779_v31 = vpop.f32.mrb[32].mxu1  ;;  %v1115_v32 = vpop.f32.mrb[64].mxu0 }
 0x21c   : > { %v780_v35 = vadd.f32 %v779_v31, %v688_v33  ;;  %v2089_v4 = vpop.f32.mrb[33].mxu1  ;;  %v2151_v36 = vpop.f32.mrb[65].mxu0 }
 0x21d   : > { %v782_v39 = vpop.f32.mrb[34].mxu1  ;;  %v1118_v20 = vpop.f32.mrb[66].mxu0 }
 0x21e   : > { %v783_v46 = vadd.f32 %v782_v39, %v691_v37  ;;  %v2090_v40 = vpop.f32.mrb[35].mxu1  ;;  %v2152_v41 = vpop.f32.mrb[67].mxu0  ;;  %v902_v19 = vadd.f32 %v887_v48, %v780_v35 }
 0x220   : > { %v903_v49 = vadd.f32 %v890_v54, %v783_v46 }
 0x223   : > { %v973_v51 = vpop.f32.mrb[36].mxu1  ;;  %v1123_v52 = vpop.f32.mrb[68].mxu0 }
 0x224   : > { %v1012_v43 = vadd.f32 %v973_v51, %v894_v58  ;;  %v2117_v30 = vpop.f32.mrb[37].mxu1  ;;  %v2155_v55 = vpop.f32.mrb[69].mxu0 }
 0x225   : > { %v976_v56 = vpop.f32.mrb[38].mxu1  ;;  %v1126_v34 = vpop.f32.mrb[70].mxu0 }
 0x226   : > { %v1013_v38 = vadd.f32 %v976_v56, %v895_v59  ;;  %v2118_v57 = vpop.f32.mrb[39].mxu1  ;;  %v2156_v60 = vpop.f32.mrb[71].mxu0  ;;  %v1130_v33 = vadd.f32 %v1091_v61, %v1012_v43 }
 0x228   : > { %v1131_v62 = vadd.f32 %v1094_v44, %v1013_v38 }
 0x22b   : > { %v981_v63 = vpop.f32.mrb[40].mxu1  ;;  %v1327_v0 = vpop.f32.mrb[72].mxu0 }
 0x22c   : > { %v1014_v2 = vadd.f32 %v981_v63, %v896_v8  ;;  %v2121_v37 = vpop.f32.mrb[41].mxu1  ;;  %v2183_v5 = vpop.f32.mrb[73].mxu0 }
 0x22d   : > { %v984_v6 = vpop.f32.mrb[42].mxu1  ;;  %v1330_v48 = vpop.f32.mrb[74].mxu0 }
 0x22e   : > { %v1015_v54 = vadd.f32 %v984_v6, %v897_v9  ;;  %v2122_v7 = vpop.f32.mrb[43].mxu1  ;;  %v2184_v10 = vpop.f32.mrb[75].mxu0  ;;  %v1132_v58 = vadd.f32 %v1099_v11, %v1014_v2 }
 0x230   : > { %v1133_v12 = vadd.f32 %v1102_v16, %v1015_v54 }
 0x233   : > { %v989_v13 = vpop.f32.mrb[44].mxu1  ;;  %v1335_v14 = vpop.f32.mrb[76].mxu0 }
 0x234   : > { %v1016_v15 = vadd.f32 %v989_v13, %v898_v17  ;;  %v2125_v59 = vpop.f32.mrb[45].mxu1  ;;  %v2187_v18 = vpop.f32.mrb[77].mxu0 }
 0x235   : > { %v992_v47 = vpop.f32.mrb[46].mxu1  ;;  %v1338_v61 = vpop.f32.mrb[78].mxu0 }
 0x236   : > { %v1017_v44 = vadd.f32 %v992_v47, %v899_v27  ;;  %v2126_v23 = vpop.f32.mrb[47].mxu1  ;;  %v2188_v22 = vpop.f32.mrb[79].mxu0  ;;  %v1134_v8 = vadd.f32 %v1107_v25, %v1016_v15 }
 0x238   : > { %v1135_v53 = vadd.f32 %v1110_v42, %v1017_v44 }
 0x23b   : > { %v997_v24 = vpop.f32.mrb[48].mxu1  ;;  %v1343_v3 = vpop.f32.mrb[80].mxu0 }
 0x23c   : > { %v1018_v26 = vadd.f32 %v997_v24, %v900_v50  ;;  %v2129_v9 = vpop.f32.mrb[49].mxu1  ;;  %v2191_v45 = vpop.f32.mrb[81].mxu0 }
 0x23d   : > { %v1000_v28 = vpop.f32.mrb[50].mxu1  ;;  %v1346_v11 = vpop.f32.mrb[82].mxu0 }
 0x23e   : > { %v1019_v16 = vadd.f32 %v1000_v28, %v901_v29  ;;  %v2130_v21 = vpop.f32.mrb[51].mxu1  ;;  %v2192_v31 = vpop.f32.mrb[83].mxu0  ;;  %v1136_v17 = vadd.f32 %v1115_v32, %v1018_v26 }
 0x240   : > { %v1137_v35 = vadd.f32 %v1118_v20, %v1019_v16 }
 0x243   : > { %v1005_v4 = vpop.f32.mrb[52].mxu1  ;;  %v1351_v36 = vpop.f32.mrb[84].mxu0 }
 0x244   : > { %v1020_v39 = vadd.f32 %v1005_v4, %v902_v19  ;;  %v2133_v27 = vpop.f32.mrb[53].mxu1  ;;  %v2195_v46 = vpop.f32.mrb[85].mxu0 }
 0x245   : > { %v1008_v40 = vpop.f32.mrb[54].mxu1  ;;  %v1354_v25 = vpop.f32.mrb[86].mxu0 }
 0x246   : > { %v1021_v42 = vadd.f32 %v1008_v40, %v903_v49  ;;  %v2134_v41 = vpop.f32.mrb[55].mxu1  ;;  %v2196_v51 = vpop.f32.mrb[87].mxu0  ;;  %v1138_v50 = vadd.f32 %v1123_v52, %v1020_v39 }
 0x248   : > { %v1139_v43 = vadd.f32 %v1126_v34, %v1021_v42 }
 0x24b   : > { %v1209_v30 = vpop.f32.mrb[56].mxu1  ;;  %v1359_v55 = vpop.f32.mrb[88].mxu0 }
 0x24c   : > { %v1248_v56 = vadd.f32 %v1209_v30, %v1130_v33  ;;  %v2161_v29 = vpop.f32.mrb[57].mxu1  ;;  %v2199_v38 = vpop.f32.mrb[89].mxu0 }
 0x24d   : > { %v1212_v57 = vpop.f32.mrb[58].mxu1  ;;  %v1362_v32 = vpop.f32.mrb[90].mxu0 }
 0x24e   : > { %v1249_v20 = vadd.f32 %v1212_v57, %v1131_v62  ;;  %v2162_v60 = vpop.f32.mrb[59].mxu1  ;;  %v2200_v63 = vpop.f32.mrb[91].mxu0  ;;  %v1366_v19 = vadd.f32 %v1327_v0, %v1248_v56 }
 0x250   : > { %v1367_v2 = vadd.f32 %v1330_v48, %v1249_v20 }
 0x253   : > { %v1217_v37 = vpop.f32.mrb[60].mxu1  ;;  %v1563_v5 = vpop.f32.mrb[92].mxu0 }
 0x254   : > { %v1250_v6 = vadd.f32 %v1217_v37, %v1132_v58  ;;  %v2165_v49 = vpop.f32.mrb[61].mxu1  ;;  %v2227_v54 = vpop.f32.mrb[93].mxu0 }
 0x255   : > { %v1220_v7 = vpop.f32.mrb[62].mxu1  ;;  %v1566_v52 = vpop.f32.mrb[94].mxu0 }
 0x256   : > { %v1251_v34 = vadd.f32 %v1220_v7, %v1133_v12  ;;  %v2166_v10 = vpop.f32.mrb[63].mxu1  ;;  %v2228_v13 = vpop.f32.mrb[95].mxu0  ;;  %v1368_v33 = vadd.f32 %v1335_v14, %v1250_v6 }
 0x258   : > { %v1369_v15 = vadd.f32 %v1338_v61, %v1251_v34 }
 0x25b   : > { %v1225_v59 = vpop.f32.mrb[64].mxu1  ;;  %v1571_v18 = vpop.f32.mrb[96].mxu0 }
 0x25c   : > { %v1252_v47 = vadd.f32 %v1225_v59, %v1134_v8  ;;  %v2169_v62 = vpop.f32.mrb[65].mxu1  ;;  %v2231_v44 = vpop.f32.mrb[97].mxu0 }
 0x25d   : > { %v1228_v23 = vpop.f32.mrb[66].mxu1  ;;  %v1574_v0 = vpop.f32.mrb[98].mxu0 }
 0x25e   : > { %v1253_v48 = vadd.f32 %v1228_v23, %v1135_v53  ;;  %v2170_v22 = vpop.f32.mrb[67].mxu1  ;;  %v2232_v24 = vpop.f32.mrb[99].mxu0  ;;  %v1370_v58 = vadd.f32 %v1343_v3, %v1252_v47 }
 0x260   : > { %v2727_v26 = vadd.f32 %v1346_v11, %v1253_v48 }
 0x263   : > { %v1233_v9 = vpop.f32.mrb[68].mxu1  ;;  %v1579_v45 = vpop.f32.mrb[100].mxu0 }
 0x264   : > { %v1254_v12 = vadd.f32 %v1233_v9, %v1136_v17  ;;  %v2173_v28 = vpop.f32.mrb[69].mxu1  ;;  %v2235_v16 = vpop.f32.mrb[101].mxu0 }
 0x265   : > { %v1236_v14 = vpop.f32.mrb[70].mxu1  ;;  %v1582_v61 = vpop.f32.mrb[102].mxu0 }
 0x266   : > { %v1255_v21 = vadd.f32 %v1236_v14, %v1137_v35  ;;  %v2174_v31 = vpop.f32.mrb[71].mxu1  ;;  %v2236_v8 = vpop.f32.mrb[103].mxu0  ;;  %v1372_v4 = vadd.f32 %v1351_v36, %v1254_v12 }
 0x268   : > { %v2729_v39 = vadd.f32 %v1354_v25, %v1255_v21 }
 0x26b   : > { %v1241_v27 = vpop.f32.mrb[72].mxu1  ;;  %v2731_v53 = vpop.f32.mrb[104].mxu0 }
 0x26c   : > { %v1256_v46 = vadd.f32 %v1241_v27, %v1138_v50  ;;  %v2177_v3 = vpop.f32.mrb[73].mxu1  ;;  %v2239_v11 = vpop.f32.mrb[105].mxu0  ;;  %v2742_v50 = vld [vmem:[%s2846_s5] ss:$0 sm:$0xff] }
 0x26d   : > { %v1244_v40 = vpop.f32.mrb[74].mxu1  ;;  %v1590_v42 = vpop.f32.mrb[106].mxu0 }
 0x26e   : > { %v1257_v41 = vadd.f32 %v1244_v40, %v1139_v43  ;;  %v2178_v17 = vpop.f32.mrb[75].mxu1  ;;  %v2240_v51 = vpop.f32.mrb[107].mxu0  ;;  %v2733_v30 = vadd.f32 %v1359_v55, %v1256_v46 }
 0x270   : > { %v2735_v56 = vadd.f32 %v1362_v32, %v1257_v41 }
 0x273   : > { %v1445_v35 = vpop.f32.mrb[76].mxu1  ;;  %v2737_v29 = vpop.f32.mrb[108].mxu0 }
 0x274   : > { %v1484_v36 = vadd.f32 %v1445_v35, %v1366_v19  ;;  %v2205_v25 = vpop.f32.mrb[77].mxu1  ;;  %v2243_v38 = vpop.f32.mrb[109].mxu0 }
 0x275   : > { %v1448_v57 = vpop.f32.mrb[78].mxu1  ;;  %v2744_v20 = vpop.f32.mrb[110].mxu0 }
 0x276   : > { %v1602_v43 = vadd.f32 %v1563_v5, %v1484_v36  ;;  %v1485_v60 = vadd.f32 %v1448_v57, %v1367_v2  ;;  %v2206_v55 = vpop.f32.mrb[79].mxu1  ;;  %v2244_v63 = vpop.f32.mrb[111].mxu0 }
 0x277   : > { %v2286_v63 = vld [vmem:[%s2388_s20 + $0x10] sm:$0xff] }
 0x278   : > { %v1619_v32 = vadd.f32 %v2742_v50, %v1602_v43  ;;  %v1603_v37 = vadd.f32 %v1566_v52, %v1485_v60 }
 0x27a   : > { %v1620_v6 = vadd.f32 %v2742_v50, %v1603_v37  ;;  %v1629_v49 = vmax.f32 %v1619_v32, 0.0  ;;  %v1756_v32 = vrot.slane %v2286_v63, 3  ;;  %v2287_v37 = vld [vmem:[%s2388_s20 + $0x18] sm:$0xff] }
 0x27b   : > { %v1453_v19 = vpop.f32.mrb[80].mxu1 }
 0x27c   : > { %v1630_v54 = vmax.f32 %v1620_v6, 0.0  ;;  %v1486_v7 = vadd.f32 %v1453_v19, %v1368_v33  ;;  %v2209_v34 = vpop.f32.mrb[81].mxu1 }
 0x27d   : > { %v1456_v10 = vpop.f32.mrb[82].mxu1 }
 0x27e   : > { %v1639_v13 = vpack.c.bf16 %v1630_v54, %v1629_v49  ;;  %v1604_v59 = vadd.f32 %v1571_v18, %v1486_v7  ;;  %v1487_v47 = vadd.f32 %v1456_v10, %v1369_v15  ;;  %v2210_v62 = vpop.f32.mrb[83].mxu1 }
 0x280   : > { %v1621_v5 = vadd.f32 %v2742_v50, %v1604_v59  ;;  %v1605_v2 = vadd.f32 %v1574_v0, %v1487_v47  ;;  %2248 = vmatmul.mubr.msk.bf16.vlgmr.msra.gmra.mrb[96].mxu1 %vm556_vm3, %v1639_v13  ;;  %v2288_v59 = vld [vmem:[%s2388_s20 + $0x20] sm:$0xff] }
 0x281   : > { %2251 = vmatprep.mubr.msk.bf16.mxu1 %vm2305_vm0, %v2304_v1  ;;  %v1760_v47 = vrot.slane %v2288_v59, 3 }
 0x282   : > { %v1622_v52 = vadd.f32 %v2742_v50, %v1605_v2  ;;  %v1631_v23 = vmax.f32 %v1621_v5, 0.0  ;;  %v2289_v2 = vld [vmem:[%s2388_s20 + $0x28] sm:$0xff] }
 0x283   : > { %v1461_v44 = vpop.f32.mrb[84].mxu1 }
 0x284   : > { %v1632_v48 = vmax.f32 %v1622_v52, 0.0  ;;  %v1488_v33 = vadd.f32 %v1461_v44, %v1370_v58  ;;  %v2213_v22 = vpop.f32.mrb[85].mxu1  ;;  %v1762_v52 = vrot.slane %v2289_v2, 3 }
 0x285   : > { %v1464_v24 = vpop.f32.mrb[86].mxu1 }
 0x286   : > { %v1640_v9 = vpack.c.bf16 %v1632_v48, %v1631_v23  ;;  %v1606_v18 = vadd.f32 %v1579_v45, %v1488_v33  ;;  %v1489_v15 = vadd.f32 %v1464_v24, %v2727_v26  ;;  %v2214_v12 = vpop.f32.mrb[87].mxu1 }
 0x288   : > { %v1623_v0 = vadd.f32 %v2742_v50, %v1606_v18  ;;  %v1607_v28 = vadd.f32 %v1582_v61, %v1489_v15  ;;  %2252 = vmatmul.mubr.msk.bf16.gmra.mrb[100].mxu1 %vm556_vm3, %v1640_v9  ;;  %v1763_v9 = vsel %vm1754_vm4, %v1760_v47, %v1762_v52 }
 0x289   : > { %2255 = vmatprep.mubr.msk.bf16.mxu1 %vm2305_vm0, %v2304_v1 }
 0x28a   : > { %v1624_v16 = vadd.f32 %v2742_v50, %v1607_v28  ;;  %v1633_v21 = vmax.f32 %v1623_v0, 0.0  ;;  %v2290_v0 = vld [vmem:[%s2388_s20 + $0x30] sm:$0xff] }
 0x28b   : > { %v1469_v14 = vpop.f32.mrb[88].mxu1  ;;  %v1764_v28 = vrot.slane %v2290_v0, 3 }
 0x28c   : > { %v1634_v58 = vmax.f32 %v1624_v16, 0.0  ;;  %v1490_v31 = vadd.f32 %v1469_v14, %v1372_v4  ;;  %v2217_v8 = vpop.f32.mrb[89].mxu1 }
 0x28d   : > { %v1472_v27 = vpop.f32.mrb[90].mxu1 }
 0x28e   : > { %v1641_v45 = vpack.c.bf16 %v1634_v58, %v1633_v21  ;;  %v1608_v26 = vadd.f32 %v2731_v53, %v1490_v31  ;;  %v1491_v46 = vadd.f32 %v1472_v27, %v2729_v39  ;;  %v2218_v3 = vpop.f32.mrb[91].mxu1  ;;  %v2291_v21 = vld [vmem:[%s2388_s20 + $0x38] sm:$0xff]  ;;  %v1765_v27 = vsel %vm1754_vm4, %v1762_v52, %v1764_v28 }
 0x28f   : > { %v1766_v58 = vrot.slane %v2291_v21, 3 }
 0x290   : > { %v1625_v61 = vadd.f32 %v2742_v50, %v1608_v26  ;;  %v1609_v11 = vadd.f32 %v1590_v42, %v1491_v46  ;;  %2256 = vmatmul.mubr.msk.bf16.gmra.mrb[104].mxu1 %vm556_vm3, %v1641_v45 }
 0x291   : > { %2259 = vmatprep.mubr.msk.bf16.mxu1 %vm2305_vm0, %v2304_v1  ;;  %v1767_v3 = vsel %vm1754_vm4, %v1764_v28, %v1766_v58 }
 0x292   : > { %v1626_v40 = vadd.f32 %v2742_v50, %v1609_v11  ;;  %v1635_v4 = vmax.f32 %v1625_v61, 0.0 }
 0x293   : > { %v1477_v41 = vpop.f32.mrb[92].mxu1 }
 0x294   : > { %v1636_v17 = vmax.f32 %v1626_v40, 0.0  ;;  %v1492_v51 = vadd.f32 %v1477_v41, %v2733_v30  ;;  %v2221_v53 = vpop.f32.mrb[93].mxu1  ;;  %v2292_v41 = vld [vmem:[%s2388_s20 + $0x40] sm:$0xff] }
 0x295   : > { %v1480_v35 = vpop.f32.mrb[94].mxu1  ;;  %v2293_v53 = vld [vmem:[%s2388_s20 + $0x48] sm:$0xff] }
 0x296   : > { %v1642_v39 = vpack.c.bf16 %v1636_v17, %v1635_v4  ;;  %v1610_v36 = vadd.f32 %v2737_v29, %v1492_v51  ;;  %v1493_v42 = vadd.f32 %v1480_v35, %v2735_v56  ;;  %v2222_v25 = vpop.f32.mrb[95].mxu1  ;;  %v2285_v56 = vld [vmem:[%s2388_s20 + $0x8] sm:$0xff]  ;;  %v1768_v4 = vrot.slane %v2292_v41, 3 }
 0x297   : > { %v1755_v29 = vrot.slane %v2285_v56, 3  ;;  %v1770_v35 = vrot.slane %v2293_v53, 3  ;;  %v2294_v56 = vld [vmem:[%s2388_s20 + $0x50] sm:$0xff] }
 0x298   : > { %v1627_v38 = vadd.f32 %v2742_v50, %v1610_v36  ;;  %v1611_v57 = vadd.f32 %v2744_v20, %v1493_v42  ;;  %2260 = vmatmul.mubr.msk.bf16.gmra.mrb[108].mxu1 %vm556_vm3, %v1642_v39  ;;  %v2781_v20 = vld [vmem:[%s2848_s7] ss:$0 sm:$0xff]  ;;  %v1769_v42 = vsel %vm1754_vm4, %v1766_v58, %v1768_v4 }
 0x299   : > { %2263 = vmatprep.mubr.msk.bf16.mxu1 %vm2305_vm0, %v2304_v1  ;;  %v1758_v1 = vrot.slane %v2287_v37, 3  ;;  %v1757_v6 = vsel %vm1754_vm4, %v1755_v29, %v1756_v32  ;;  %v1772_v29 = vrot.slane %v2294_v56, 3  ;;  %v2295_v37 = vld [vmem:[%s2388_s20 + $0x58] sm:$0xff] }
 0x29a   : > { %v1628_v30 = vadd.f32 %v2742_v50, %v1611_v57  ;;  %v1637_v43 = vmax.f32 %v1627_v38, 0.0 }
 0x29b   : > { %v1759_v7 = vsel %vm1754_vm4, %v1756_v32, %v1758_v1  ;;  %v1761_v48 = vsel %vm1754_vm4, %v1758_v1, %v1760_v47  ;;  %v1774_v1 = vrot.slane %v2295_v37, 3 }
 0x29c   : > { %v1638_v60 = vmax.f32 %v1628_v30, 0.0  ;;  %v1771_v30 = vsel %vm1754_vm4, %v1768_v4, %v1770_v35 }
 0x29e   : > { %v1643_v55 = vpack.c.bf16 %v1638_v60, %v1637_v43 }
 0x2a0   : > { %2264 = vmatmul.mubr.msk.bf16.gmra.mrb[112].mxu1 %vm556_vm3, %v1643_v55 }
 0x353   : > { %v1704_v50 = vpop.f32.mrb[96].mxu1 }
 0x354   : > { %v1705_v19 = vadd.f32 %v2781_v20, %v1704_v50  ;;  %v2249_v49 = vpop.f32.mrb[97].mxu1 }
 0x355   : > { %v1707_v54 = vpop.f32.mrb[98].mxu1 }
 0x356   : > { %v1786_v34 = vadd.f32 %v1757_v6, %v1705_v19  ;;  %v1708_v10 = vadd.f32 %v2781_v20, %v1707_v54  ;;  %v2250_v13 = vpop.f32.mrb[99].mxu1  ;;  %v1773_v19 = vsel %vm1754_vm4, %v1770_v35, %v1772_v29 }
 0x358   : > { %v1796_v62 = vmax.f32 %v1786_v34, 0.0  ;;  %v1787_v5 = vadd.f32 %v1759_v7, %v1708_v10  ;;  %v1775_v34 = vsel %vm1754_vm4, %v1772_v29, %v1774_v1 }
 0x35a   : > { %1806 = vst.msk [vmem:[%s2792_s10] sm:$0xff] %vm342_vm1, %v1796_v62  ;;  %v1797_v44 = vmax.f32 %v1787_v5, 0.0 }
 0x35b   : > { %v1712_v23 = vpop.f32.mrb[100].mxu1 }
 0x35c   : > { %1807 = vst.msk [vmem:[%s2792_s10 + $0x8] sm:$0xff] %vm342_vm1, %v1797_v44  ;;  %v1713_v33 = vadd.f32 %v2781_v20, %v1712_v23  ;;  %v2253_v22 = vpop.f32.mrb[101].mxu1 }
 0x35d   : > { %v1715_v24 = vpop.f32.mrb[102].mxu1 }
 0x35e   : > { %v1788_v18 = vadd.f32 %v1761_v48, %v1713_v33  ;;  %v1716_v15 = vadd.f32 %v2781_v20, %v1715_v24  ;;  %v2254_v12 = vpop.f32.mrb[103].mxu1 }
 0x360   : > { %v1798_v16 = vmax.f32 %v1788_v18, 0.0  ;;  %v1789_v14 = vadd.f32 %v1763_v9, %v1716_v15 }
 0x362   : > { %1808 = vst.msk [vmem:[%s2792_s10 + $0x10] sm:$0xff] %vm342_vm1, %v1798_v16  ;;  %v1799_v31 = vmax.f32 %v1789_v14, 0.0 }
 0x363   : > { %v1720_v8 = vpop.f32.mrb[104].mxu1 }
 0x364   : > { %1809 = vst.msk [vmem:[%s2792_s10 + $0x18] sm:$0xff] %vm342_vm1, %v1799_v31  ;;  %v1721_v45 = vadd.f32 %v2781_v20, %v1720_v8  ;;  %v2257_v26 = vpop.f32.mrb[105].mxu1 }
 0x365   : > { %v1723_v46 = vpop.f32.mrb[106].mxu1 }
 0x366   : > { %v1790_v61 = vadd.f32 %v1765_v27, %v1721_v45  ;;  %v1724_v11 = vadd.f32 %v2781_v20, %v1723_v46  ;;  %v2258_v40 = vpop.f32.mrb[107].mxu1 }
 0x368   : > { %v1800_v17 = vmax.f32 %v1790_v61, 0.0  ;;  %v1791_v51 = vadd.f32 %v1767_v3, %v1724_v11 }
 0x36a   : > { %1810 = vst.msk [vmem:[%s2792_s10 + $0x20] sm:$0xff] %vm342_vm1, %v1800_v17  ;;  %v1801_v39 = vmax.f32 %v1791_v51, 0.0 }
 0x36b   : > { %v1728_v36 = vpop.f32.mrb[108].mxu1 }
 0x36c   : > { %1811 = vst.msk [vmem:[%s2792_s10 + $0x28] sm:$0xff] %vm342_vm1, %v1801_v39  ;;  %v1729_v25 = vadd.f32 %v2781_v20, %v1728_v36  ;;  %v2261_v38 = vpop.f32.mrb[109].mxu1 }
 0x36d   : > { %v1731_v57 = vpop.f32.mrb[110].mxu1 }
 0x36e   : > { %v1792_v43 = vadd.f32 %v1769_v42, %v1729_v25  ;;  %v1732_v60 = vadd.f32 %v2781_v20, %v1731_v57  ;;  %v2262_v55 = vpop.f32.mrb[111].mxu1 }
 0x370   : > { %v1802_v63 = vmax.f32 %v1792_v43, 0.0  ;;  %v1793_v32 = vadd.f32 %v1771_v30, %v1732_v60 }
 0x372   : > { %1812 = vst.msk [vmem:[%s2792_s10 + $0x30] sm:$0xff] %vm342_vm1, %v1802_v63  ;;  %v1803_v50 = vmax.f32 %v1793_v32, 0.0 }
 0x373   : > { %v1736_v6 = vpop.f32.mrb[112].mxu1 }
 0x374   : > { %1813 = vst.msk [vmem:[%s2792_s10 + $0x38] sm:$0xff] %vm342_vm1, %v1803_v50  ;;  %v1737_v49 = vadd.f32 %v2781_v20, %v1736_v6  ;;  %v2265_v54 = vpop.f32.mrb[113].mxu1 }
 0x375   : > { %v1739_v7 = vpop.f32.mrb[114].mxu1 }
 0x376   : > { %v1794_v10 = vadd.f32 %v1773_v19, %v1737_v49  ;;  %v1740_v13 = vadd.f32 %v2781_v20, %v1739_v7  ;;  %v2266_v59 = vpop.f32.mrb[115].mxu1 }
 0x378   : > { %v1804_v47 = vmax.f32 %v1794_v10, 0.0  ;;  %v1795_v62 = vadd.f32 %v1775_v34, %v1740_v13 }
 0x37a   : > { %1814 = vst.msk [vmem:[%s2792_s10 + $0x40] sm:$0xff] %vm342_vm1, %v1804_v47  ;;  %v1805_v5 = vmax.f32 %v1795_v62, 0.0 }
 0x37c   : > { %1815 = vst.msk [vmem:[%s2792_s10 + $0x48] sm:$0xff] %vm342_vm1, %v1805_v5 }
 0x37d PF: > { %s18_s27 = sadd.s32 1, %s2302_s27  }
 0x37e   : > { %p15_p4 = scmp.ge.s32.totalorder %s18_s27, 4  }
 0x380   :  { %17 = sbr.rel (!%p15_p4) target bundleno = 1 (0x1), region = 90 }

</bundles_post_ra>
